<compile_context>
chip_gen: v6e
topology: v6e:2x2x1
jax: 0.10.0
libtpu: 0.0.40
codegen_flags: <defaults>
</compile_context>

<pallas_src>
import jax
import jax.numpy as jnp
import numpy as np
from jax.experimental import pallas as pl
from jax.experimental.pallas import tpu as pltpu

IN_DIM = 2
LATENT_DIM = 3
BN_EPS = 1e-5
R8 = 8  # sublane tile / packed-block height


# --------------------------------- kernel ---------------------------------

def _make_kernel(unit_offs, x_off, gm_offs, NR, W, L, F, N):
    """All offsets are compile-time python ints (multiples of 8)."""

    def kernel(p_ref, o_ref):
        def blk(off):
            # static, 8-row-aligned ref-view load of one (8, W) tile
            return p_ref[off:off + R8, :]

        def brow(t, r):
            # broadcast sublane row r of an (8, W) value across all 8 rows
            return jnp.broadcast_to(t[r:r + 1, :], (R8, W))

        def unit(t, u):
            # 1x1 conv (or rotation) over the NR sublane rows:
            # acc = bias_block + sum_k  weight_block_k * brow(t, k)
            base = unit_offs[u]
            acc = blk(base + R8 * NR)            # pre-broadcast bias block
            for k in range(NR):
                acc = acc + blk(base + R8 * k) * brow(t, k)
            return acc

        def relu(t):
            return jnp.maximum(t, 0.0)

        x = blk(x_off)                           # (8, W): rows n*L + c, lanes = batch

        # ---- concat_block0 : conv+BN(folded)+ReLU x2, conv ----
        h = relu(unit(x, 0))
        h = relu(unit(h, 1))
        lf0 = unit(h, 2)                         # valid rows n*L + (F + j)

        # Global max over N (points live on sublanes, batch on lanes):
        # a per-lane max of N sublane-broadcast rows, masked back onto the
        # "extra channel" rows.  O(1) in B, no lane shuffles.
        x1 = x
        for j in range(L - F):
            m = brow(lf0, F + j)
            for n in range(1, N):
                m = jnp.maximum(m, brow(lf0, n * L + F + j))
            x1 = x1 + m * blk(gm_offs[j])

        # ---- sum_block1 ----
        h = relu(unit(x1, 3))
        h = relu(unit(h, 4))
        lf1 = unit(h, 5)
        x2 = x1 + lf1

        # ---- sum_block2 ----
        h = relu(unit(x2, 6))
        h = relu(unit(h, 7))
        lf2 = unit(h, 8)
        x3 = x2 + lf2

        # ---- rotation: kron(R^T, I_L) over the (point, channel) sublanes ----
        y3 = unit(x3, 10)                        # zero-bias unit
        y1 = (y3 - lf2) - lf1

        # ---- direct ref-slice stores: [ y1 ; cls(y3) ; cls(x3) ] ----
        o_ref[0:8, :] = y1
        o_ref[8:16, :] = unit(y3, 9)             # y_class
        o_ref[16:24, :] = unit(x3, 9)            # x_class

    return kernel


# ------------------------------ JAX wrapper -------------------------------

def rotation_matrix(origin, target):
    enc_o = jnp.eye(IN_DIM, dtype=jnp.float32)[origin]    # (B, IN_DIM)
    enc_t = jnp.eye(IN_DIM, dtype=jnp.float32)[target]    # (B, IN_DIM)
    # TODO(synk): pinverse (SVD) has no Pallas equivalent; computed in JAX glue.
    return jnp.linalg.pinv(enc_o) @ enc_t                  # (IN_DIM, IN_DIM)


def model_forward(x, origin, target, params):
    B, F, N = x.shape
    L = LATENT_DIM
    assert F == IN_DIM and N == IN_DIM, "reference forward implies N == in_dim"
    NR = N * L
    assert NR <= R8, "point*channel rows must fit in one sublane tile"
    # Narrow lane width (batch lanes only); rounds up to 128-multiples if B grows.
    W = 8 if B <= 8 else ((B + 127) // 128) * 128

    rot = rotation_matrix(origin, target)                  # (N, N), batch-shared

    # ---- build ONE packed buffer: 8-row blocks, everything pre-broadcast ----
    blocks = []

    def add_block(valid):                                  # valid: (NR, B)
        blk = jnp.zeros((R8, W), jnp.float32)
        blk = blk.at[:NR, :B].set(valid.astype(jnp.float32))
        blocks.append(blk)
        return (len(blocks) - 1) * R8                      # static row offset

    # activation block: row n*L + c  <-  x[b, c, n]
    xr = jnp.zeros((N, L, B), jnp.float32)
    xr = xr.at[:, :F, :].set(jnp.transpose(x, (2, 1, 0)))
    x_off = add_block(xr.reshape(NR, B))

    # global-feature row masks (ones at rows n*L + F + j)
    gm_offs = []
    for j in range(L - F):
        m = np.zeros((NR, B), np.float32)
        for n in range(N):
            m[n * L + F + j, :] = 1.0
        gm_offs.append(add_block(jnp.asarray(m)))

    # conv / rotation "units": NR pre-broadcast weight-column blocks + bias
    def add_unit(M6, b6):
        off = None
        for k in range(NR):
            o = add_block(jnp.broadcast_to(M6[:, k:k + 1], (NR, B)))
            if off is None:
                off = o
        add_block(jnp.broadcast_to(b6[:, None], (NR, B)))
        return off

    unit_offs = []
    eyeN = jnp.eye(N, dtype=jnp.float32)
    for idx, (w, b) in enumerate(params):
        co, ci = w.shape
        out_off = F if idx == 2 else 0     # concat_block0's 3rd conv -> channels F..L-1
        Wp = jnp.zeros((L, L), jnp.float32).at[out_off:out_off + co, :ci].set(w)
        M6 = jnp.kron(eyeN, Wp)                            # block-diag over points
        b6 = jnp.tile(
            jnp.zeros((L,), jnp.float32).at[out_off:out_off + co].set(b[:, 0]), N)
        unit_offs.append(add_unit(M6, b6))
    # rotation: y3[n_out*L+c, b] = sum_{n_in} x3[n_in*L+c, b] * R[n_in, n_out]
    rot_M6 = jnp.kron(jnp.transpose(rot), jnp.eye(L, dtype=jnp.float32))
    unit_offs.append(add_unit(rot_M6, jnp.zeros((NR,), jnp.float32)))

    packed = jnp.concatenate(blocks, axis=0)               # (8*num_blocks, W)
    rows = packed.shape[0]

    kernel = _make_kernel(tuple(unit_offs), x_off, tuple(gm_offs), NR, W, L, F, N)

    out = pl.pallas_call(
        kernel,
        out_shape=jax.ShapeDtypeStruct((3 * R8, W), jnp.float32),
        grid_spec=pltpu.PrefetchScalarGridSpec(
            num_scalar_prefetch=0,
            grid=(1,),
            in_specs=[pl.BlockSpec((rows, W), lambda i: (0, 0))],
            out_specs=pl.BlockSpec((3 * R8, W), lambda i: (0, 0)),
        ),
        compiler_params=pltpu.CompilerParams(
            dimension_semantics=("arbitrary",)),
    )(packed)

    def unfold(seg):                                       # (8, W) -> (B, L, N)
        a = seg[:NR, :B].reshape(N, L, B)
        return jnp.transpose(a, (2, 1, 0))

    y1 = unfold(out[0:R8])
    y_class = unfold(out[R8:2 * R8])
    x_class = unfold(out[2 * R8:3 * R8])
    return y1[:, IN_DIM:, :], y_class, x_class


# ------------------------- parameter construction -------------------------

def init_params(key):
    """Deterministic params; BN (eval mode) folded exactly into the convs."""
    keys = iter(jax.random.split(key, 64))

    def conv(co, ci):
        bound = 1.0 / np.sqrt(ci)
        w = jax.random.uniform(next(keys), (co, ci), jnp.float32, -bound, bound)
        b = jax.random.uniform(next(keys), (co, 1), jnp.float32, -bound, bound)
        return w, b

    def bn(c):
        gamma = jax.random.uniform(next(keys), (c,), jnp.float32, 0.5, 1.5)
        beta = 0.1 * jax.random.normal(next(keys), (c,), jnp.float32)
        mean = 0.1 * jax.random.normal(next(keys), (c,), jnp.float32)
        var = jax.random.uniform(next(keys), (c,), jnp.float32, 0.5, 1.5)
        return gamma, beta, mean, var

    def fold(conv_wb, bn_p):
        w, b = conv_wb
        g, beta, mean, var = bn_p
        s = (g / jnp.sqrt(var + BN_EPS))[:, None]
        return w * s, (b - mean[:, None]) * s + beta[:, None]

    L, F = LATENT_DIM, IN_DIM
    params = []
    # concat_block0
    params.append(fold(conv(L, F), bn(L)))
    params.append(fold(conv(L, L), bn(L)))
    params.append(conv(L - F, L))
    # sum_block1 / sum_block2
    for _ in range(2):
        params.append(fold(conv(L, L), bn(L)))
        params.append(fold(conv(L, L), bn(L)))
        params.append(conv(L, L))
    # classifier
    params.append(conv(L, L))
    return params


# ------------------------------ pure-JAX ref -------------------------------

def reference(x, origin, target, params):
    (w0a, b0a), (w0b, b0b), (w0c, b0c), \
        (w1a, b1a), (w1b, b1b), (w1c, b1c), \
        (w2a, b2a), (w2b, b2b), (w2c, b2c), (wc, bc) = params

    def conv(w, b, t):  # t: (B, Ci, N)
        return jnp.einsum('oc,bcn->bon', w, t) + b[None]

    relu = jax.nn.relu
    h = relu(conv(w0a, b0a, x)); h = relu(conv(w0b, b0b, h))
    lf0 = conv(w0c, b0c, h)
    gf0 = jnp.max(lf0, axis=-1, keepdims=True)
    x1 = jnp.concatenate(
        [x, jnp.broadcast_to(gf0, (x.shape[0], gf0.shape[1], x.shape[2]))], axis=1)
    h = relu(conv(w1a, b1a, x1)); h = relu(conv(w1b, b1b, h))
    lf1 = conv(w1c, b1c, h); x2 = x1 + lf1
    h = relu(conv(w2a, b2a, x2)); h = relu(conv(w2b, b2b, h))
    lf2 = conv(w2c, b2c, h); x3 = x2 + lf2
    rot = rotation_matrix(origin, target)
    y3 = x3 @ rot
    y1 = (y3 - lf2) - lf1
    return y1[:, IN_DIM:, :], conv(wc, bc, y3), conv(wc, bc, x3)


# ----------------------------------- main ----------------------------------

if __name__ == "__main__":
    key = jax.random.PRNGKey(0)
    k_x, k_p = jax.random.split(key)

    B, N = 2, IN_DIM            # reference `x3 @ R` forces N == in_dim
    x = jax.random.normal(k_x, (B, IN_DIM, N), jnp.float32)
    origin = jnp.array([0, 1], dtype=jnp.int32)
    target = jnp.array([1, 0], dtype=jnp.int32)
    params = init_params(k_p)

    y, y_class, x_class = model_forward(x, origin, target, params)
    jax.block_until_ready((y, y_class, x_class))

    y_r, ycls_r, xcls_r = reference(x, origin, target, params)
    assert np.allclose(np.asarray(y), np.asarray(y_r), atol=1e-5, rtol=1e-5)
    assert np.allclose(np.asarray(y_class), np.asarray(ycls_r), atol=1e-5, rtol=1e-5)
    assert np.allclose(np.asarray(x_class), np.asarray(xcls_r), atol=1e-5, rtol=1e-5)

    print("KERNEL_OK")
</pallas_src>

<mosaic_0001>
module attributes {stable_mosaic.version = 11 : i64} {
  func.func @kernel(%arg0: i32, %arg1: memref<632x8xf32, #tpu.memory_space<vmem>>, %arg2: memref<24x8xf32, #tpu.memory_space<vmem>>) attributes {dimension_semantics = [#tpu.dimension_semantics<arbitrary>], iteration_bounds = array<i64: 1>, scalar_prefetch = 0 : i64, scratch_operands = 0 : i64, tpu.core_type = #tpu.core_type<tc>, window_params = [{pipeline_mode = #tpu.pipeline_mode<synchronous>, transform_indices = @transform_0, window_bounds = array<i64: 632, 8>}, {pipeline_mode = #tpu.pipeline_mode<synchronous>, transform_indices = @transform_1, window_bounds = array<i64: 24, 8>}]} {
    %c0 = arith.constant 0 : index
    %c0_0 = arith.constant 0 : index
    %0 = vector.load %arg1[%c0, %c0_0] : memref<632x8xf32, #tpu.memory_space<vmem>>, vector<8x8xf32>
    %c64 = arith.constant 64 : index
    %c0_1 = arith.constant 0 : index
    %1 = vector.load %arg1[%c64, %c0_1] : memref<632x8xf32, #tpu.memory_space<vmem>>, vector<8x8xf32>
    %c16 = arith.constant 16 : index
    %c0_2 = arith.constant 0 : index
    %2 = vector.load %arg1[%c16, %c0_2] : memref<632x8xf32, #tpu.memory_space<vmem>>, vector<8x8xf32>
    %3 = vector.extract_strided_slice %0 {offsets = [0, 0], sizes = [1, 8], strides = [1, 1]} : vector<8x8xf32> to vector<1x8xf32>
    %4 = vector.shape_cast %3 : vector<1x8xf32> to vector<1x8xf32>
    %5 = vector.broadcast %4 : vector<1x8xf32> to vector<8x8xf32>
    %6 = arith.mulf %2, %5 : vector<8x8xf32>
    %7 = arith.addf %1, %6 : vector<8x8xf32>
    %c24 = arith.constant 24 : index
    %c0_3 = arith.constant 0 : index
    %8 = vector.load %arg1[%c24, %c0_3] : memref<632x8xf32, #tpu.memory_space<vmem>>, vector<8x8xf32>
    %9 = vector.extract_strided_slice %0 {offsets = [1, 0], sizes = [1, 8], strides = [1, 1]} : vector<8x8xf32> to vector<1x8xf32>
    %10 = vector.shape_cast %9 : vector<1x8xf32> to vector<1x8xf32>
    %11 = vector.broadcast %10 : vector<1x8xf32> to vector<8x8xf32>
    %12 = arith.mulf %8, %11 : vector<8x8xf32>
    %13 = arith.addf %7, %12 : vector<8x8xf32>
    %c32 = arith.constant 32 : index
    %c0_4 = arith.constant 0 : index
    %14 = vector.load %arg1[%c32, %c0_4] : memref<632x8xf32, #tpu.memory_space<vmem>>, vector<8x8xf32>
    %15 = vector.extract_strided_slice %0 {offsets = [2, 0], sizes = [1, 8], strides = [1, 1]} : vector<8x8xf32> to vector<1x8xf32>
    %16 = vector.shape_cast %15 : vector<1x8xf32> to vector<1x8xf32>
    %17 = vector.broadcast %16 : vector<1x8xf32> to vector<8x8xf32>
    %18 = arith.mulf %14, %17 : vector<8x8xf32>
    %19 = arith.addf %13, %18 : vector<8x8xf32>
    %c40 = arith.constant 40 : index
    %c0_5 = arith.constant 0 : index
    %20 = vector.load %arg1[%c40, %c0_5] : memref<632x8xf32, #tpu.memory_space<vmem>>, vector<8x8xf32>
    %21 = vector.extract_strided_slice %0 {offsets = [3, 0], sizes = [1, 8], strides = [1, 1]} : vector<8x8xf32> to vector<1x8xf32>
    %22 = vector.shape_cast %21 : vector<1x8xf32> to vector<1x8xf32>
    %23 = vector.broadcast %22 : vector<1x8xf32> to vector<8x8xf32>
    %24 = arith.mulf %20, %23 : vector<8x8xf32>
    %25 = arith.addf %19, %24 : vector<8x8xf32>
    %c48 = arith.constant 48 : index
    %c0_6 = arith.constant 0 : index
    %26 = vector.load %arg1[%c48, %c0_6] : memref<632x8xf32, #tpu.memory_space<vmem>>, vector<8x8xf32>
    %27 = vector.extract_strided_slice %0 {offsets = [4, 0], sizes = [1, 8], strides = [1, 1]} : vector<8x8xf32> to vector<1x8xf32>
    %28 = vector.shape_cast %27 : vector<1x8xf32> to vector<1x8xf32>
    %29 = vector.broadcast %28 : vector<1x8xf32> to vector<8x8xf32>
    %30 = arith.mulf %26, %29 : vector<8x8xf32>
    %31 = arith.addf %25, %30 : vector<8x8xf32>
    %c56 = arith.constant 56 : index
    %c0_7 = arith.constant 0 : index
    %32 = vector.load %arg1[%c56, %c0_7] : memref<632x8xf32, #tpu.memory_space<vmem>>, vector<8x8xf32>
    %33 = vector.extract_strided_slice %0 {offsets = [5, 0], sizes = [1, 8], strides = [1, 1]} : vector<8x8xf32> to vector<1x8xf32>
    %34 = vector.shape_cast %33 : vector<1x8xf32> to vector<1x8xf32>
    %35 = vector.broadcast %34 : vector<1x8xf32> to vector<8x8xf32>
    %36 = arith.mulf %32, %35 : vector<8x8xf32>
    %37 = arith.addf %31, %36 : vector<8x8xf32>
    %cst = arith.constant 0.000000e+00 : f32
    %38 = vector.broadcast %cst : f32 to vector<8x8xf32>
    %39 = arith.maximumf %37, %38 : vector<8x8xf32>
    %c120 = arith.constant 120 : index
    %c0_8 = arith.constant 0 : index
    %40 = vector.load %arg1[%c120, %c0_8] : memref<632x8xf32, #tpu.memory_space<vmem>>, vector<8x8xf32>
    %c72 = arith.constant 72 : index
    %c0_9 = arith.constant 0 : index
    %41 = vector.load %arg1[%c72, %c0_9] : memref<632x8xf32, #tpu.memory_space<vmem>>, vector<8x8xf32>
    %42 = vector.extract_strided_slice %39 {offsets = [0, 0], sizes = [1, 8], strides = [1, 1]} : vector<8x8xf32> to vector<1x8xf32>
    %43 = vector.shape_cast %42 : vector<1x8xf32> to vector<1x8xf32>
    %44 = vector.broadcast %43 : vector<1x8xf32> to vector<8x8xf32>
    %45 = arith.mulf %41, %44 : vector<8x8xf32>
    %46 = arith.addf %40, %45 : vector<8x8xf32>
    %c80 = arith.constant 80 : index
    %c0_10 = arith.constant 0 : index
    %47 = vector.load %arg1[%c80, %c0_10] : memref<632x8xf32, #tpu.memory_space<vmem>>, vector<8x8xf32>
    %48 = vector.extract_strided_slice %39 {offsets = [1, 0], sizes = [1, 8], strides = [1, 1]} : vector<8x8xf32> to vector<1x8xf32>
    %49 = vector.shape_cast %48 : vector<1x8xf32> to vector<1x8xf32>
    %50 = vector.broadcast %49 : vector<1x8xf32> to vector<8x8xf32>
    %51 = arith.mulf %47, %50 : vector<8x8xf32>
    %52 = arith.addf %46, %51 : vector<8x8xf32>
    %c88 = arith.constant 88 : index
    %c0_11 = arith.constant 0 : index
    %53 = vector.load %arg1[%c88, %c0_11] : memref<632x8xf32, #tpu.memory_space<vmem>>, vector<8x8xf32>
    %54 = vector.extract_strided_slice %39 {offsets = [2, 0], sizes = [1, 8], strides = [1, 1]} : vector<8x8xf32> to vector<1x8xf32>
    %55 = vector.shape_cast %54 : vector<1x8xf32> to vector<1x8xf32>
    %56 = vector.broadcast %55 : vector<1x8xf32> to vector<8x8xf32>
    %57 = arith.mulf %53, %56 : vector<8x8xf32>
    %58 = arith.addf %52, %57 : vector<8x8xf32>
    %c96 = arith.constant 96 : index
    %c0_12 = arith.constant 0 : index
    %59 = vector.load %arg1[%c96, %c0_12] : memref<632x8xf32, #tpu.memory_space<vmem>>, vector<8x8xf32>
    %60 = vector.extract_strided_slice %39 {offsets = [3, 0], sizes = [1, 8], strides = [1, 1]} : vector<8x8xf32> to vector<1x8xf32>
    %61 = vector.shape_cast %60 : vector<1x8xf32> to vector<1x8xf32>
    %62 = vector.broadcast %61 : vector<1x8xf32> to vector<8x8xf32>
    %63 = arith.mulf %59, %62 : vector<8x8xf32>
    %64 = arith.addf %58, %63 : vector<8x8xf32>
    %c104 = arith.constant 104 : index
    %c0_13 = arith.constant 0 : index
    %65 = vector.load %arg1[%c104, %c0_13] : memref<632x8xf32, #tpu.memory_space<vmem>>, vector<8x8xf32>
    %66 = vector.extract_strided_slice %39 {offsets = [4, 0], sizes = [1, 8], strides = [1, 1]} : vector<8x8xf32> to vector<1x8xf32>
    %67 = vector.shape_cast %66 : vector<1x8xf32> to vector<1x8xf32>
    %68 = vector.broadcast %67 : vector<1x8xf32> to vector<8x8xf32>
    %69 = arith.mulf %65, %68 : vector<8x8xf32>
    %70 = arith.addf %64, %69 : vector<8x8xf32>
    %c112 = arith.constant 112 : index
    %c0_14 = arith.constant 0 : index
    %71 = vector.load %arg1[%c112, %c0_14] : memref<632x8xf32, #tpu.memory_space<vmem>>, vector<8x8xf32>
    %72 = vector.extract_strided_slice %39 {offsets = [5, 0], sizes = [1, 8], strides = [1, 1]} : vector<8x8xf32> to vector<1x8xf32>
    %73 = vector.shape_cast %72 : vector<1x8xf32> to vector<1x8xf32>
    %74 = vector.broadcast %73 : vector<1x8xf32> to vector<8x8xf32>
    %75 = arith.mulf %71, %74 : vector<8x8xf32>
    %76 = arith.addf %70, %75 : vector<8x8xf32>
    %cst_15 = arith.constant 0.000000e+00 : f32
    %77 = vector.broadcast %cst_15 : f32 to vector<8x8xf32>
    %78 = arith.maximumf %76, %77 : vector<8x8xf32>
    %c176 = arith.constant 176 : index
    %c0_16 = arith.constant 0 : index
    %79 = vector.load %arg1[%c176, %c0_16] : memref<632x8xf32, #tpu.memory_space<vmem>>, vector<8x8xf32>
    %c128 = arith.constant 128 : index
    %c0_17 = arith.constant 0 : index
    %80 = vector.load %arg1[%c128, %c0_17] : memref<632x8xf32, #tpu.memory_space<vmem>>, vector<8x8xf32>
    %81 = vector.extract_strided_slice %78 {offsets = [0, 0], sizes = [1, 8], strides = [1, 1]} : vector<8x8xf32> to vector<1x8xf32>
    %82 = vector.shape_cast %81 : vector<1x8xf32> to vector<1x8xf32>
    %83 = vector.broadcast %82 : vector<1x8xf32> to vector<8x8xf32>
    %84 = arith.mulf %80, %83 : vector<8x8xf32>
    %85 = arith.addf %79, %84 : vector<8x8xf32>
    %c136 = arith.constant 136 : index
    %c0_18 = arith.constant 0 : index
    %86 = vector.load %arg1[%c136, %c0_18] : memref<632x8xf32, #tpu.memory_space<vmem>>, vector<8x8xf32>
    %87 = vector.extract_strided_slice %78 {offsets = [1, 0], sizes = [1, 8], strides = [1, 1]} : vector<8x8xf32> to vector<1x8xf32>
    %88 = vector.shape_cast %87 : vector<1x8xf32> to vector<1x8xf32>
    %89 = vector.broadcast %88 : vector<1x8xf32> to vector<8x8xf32>
    %90 = arith.mulf %86, %89 : vector<8x8xf32>
    %91 = arith.addf %85, %90 : vector<8x8xf32>
    %c144 = arith.constant 144 : index
    %c0_19 = arith.constant 0 : index
    %92 = vector.load %arg1[%c144, %c0_19] : memref<632x8xf32, #tpu.memory_space<vmem>>, vector<8x8xf32>
    %93 = vector.extract_strided_slice %78 {offsets = [2, 0], sizes = [1, 8], strides = [1, 1]} : vector<8x8xf32> to vector<1x8xf32>
    %94 = vector.shape_cast %93 : vector<1x8xf32> to vector<1x8xf32>
    %95 = vector.broadcast %94 : vector<1x8xf32> to vector<8x8xf32>
    %96 = arith.mulf %92, %95 : vector<8x8xf32>
    %97 = arith.addf %91, %96 : vector<8x8xf32>
    %c152 = arith.constant 152 : index
    %c0_20 = arith.constant 0 : index
    %98 = vector.load %arg1[%c152, %c0_20] : memref<632x8xf32, #tpu.memory_space<vmem>>, vector<8x8xf32>
    %99 = vector.extract_strided_slice %78 {offsets = [3, 0], sizes = [1, 8], strides = [1, 1]} : vector<8x8xf32> to vector<1x8xf32>
    %100 = vector.shape_cast %99 : vector<1x8xf32> to vector<1x8xf32>
    %101 = vector.broadcast %100 : vector<1x8xf32> to vector<8x8xf32>
    %102 = arith.mulf %98, %101 : vector<8x8xf32>
    %103 = arith.addf %97, %102 : vector<8x8xf32>
    %c160 = arith.constant 160 : index
    %c0_21 = arith.constant 0 : index
    %104 = vector.load %arg1[%c160, %c0_21] : memref<632x8xf32, #tpu.memory_space<vmem>>, vector<8x8xf32>
    %105 = vector.extract_strided_slice %78 {offsets = [4, 0], sizes = [1, 8], strides = [1, 1]} : vector<8x8xf32> to vector<1x8xf32>
    %106 = vector.shape_cast %105 : vector<1x8xf32> to vector<1x8xf32>
    %107 = vector.broadcast %106 : vector<1x8xf32> to vector<8x8xf32>
    %108 = arith.mulf %104, %107 : vector<8x8xf32>
    %109 = arith.addf %103, %108 : vector<8x8xf32>
    %c168 = arith.constant 168 : index
    %c0_22 = arith.constant 0 : index
    %110 = vector.load %arg1[%c168, %c0_22] : memref<632x8xf32, #tpu.memory_space<vmem>>, vector<8x8xf32>
    %111 = vector.extract_strided_slice %78 {offsets = [5, 0], sizes = [1, 8], strides = [1, 1]} : vector<8x8xf32> to vector<1x8xf32>
    %112 = vector.shape_cast %111 : vector<1x8xf32> to vector<1x8xf32>
    %113 = vector.broadcast %112 : vector<1x8xf32> to vector<8x8xf32>
    %114 = arith.mulf %110, %113 : vector<8x8xf32>
    %115 = arith.addf %109, %114 : vector<8x8xf32>
    %116 = vector.extract_strided_slice %115 {offsets = [2, 0], sizes = [1, 8], strides = [1, 1]} : vector<8x8xf32> to vector<1x8xf32>
    %117 = vector.shape_cast %116 : vector<1x8xf32> to vector<1x8xf32>
    %118 = vector.broadcast %117 : vector<1x8xf32> to vector<8x8xf32>
    %119 = vector.extract_strided_slice %115 {offsets = [5, 0], sizes = [1, 8], strides = [1, 1]} : vector<8x8xf32> to vector<1x8xf32>
    %120 = vector.shape_cast %119 : vector<1x8xf32> to vector<1x8xf32>
    %121 = vector.broadcast %120 : vector<1x8xf32> to vector<8x8xf32>
    %122 = arith.maximumf %118, %121 : vector<8x8xf32>
    %c8 = arith.constant 8 : index
    %c0_23 = arith.constant 0 : index
    %123 = vector.load %arg1[%c8, %c0_23] : memref<632x8xf32, #tpu.memory_space<vmem>>, vector<8x8xf32>
    %124 = arith.mulf %122, %123 : vector<8x8xf32>
    %125 = arith.addf %0, %124 : vector<8x8xf32>
    %c232 = arith.constant 232 : index
    %c0_24 = arith.constant 0 : index
    %126 = vector.load %arg1[%c232, %c0_24] : memref<632x8xf32, #tpu.memory_space<vmem>>, vector<8x8xf32>
    %c184 = arith.constant 184 : index
    %c0_25 = arith.constant 0 : index
    %127 = vector.load %arg1[%c184, %c0_25] : memref<632x8xf32, #tpu.memory_space<vmem>>, vector<8x8xf32>
    %128 = vector.extract_strided_slice %125 {offsets = [0, 0], sizes = [1, 8], strides = [1, 1]} : vector<8x8xf32> to vector<1x8xf32>
    %129 = vector.shape_cast %128 : vector<1x8xf32> to vector<1x8xf32>
    %130 = vector.broadcast %129 : vector<1x8xf32> to vector<8x8xf32>
    %131 = arith.mulf %127, %130 : vector<8x8xf32>
    %132 = arith.addf %126, %131 : vector<8x8xf32>
    %c192 = arith.constant 192 : index
    %c0_26 = arith.constant 0 : index
    %133 = vector.load %arg1[%c192, %c0_26] : memref<632x8xf32, #tpu.memory_space<vmem>>, vector<8x8xf32>
    %134 = vector.extract_strided_slice %125 {offsets = [1, 0], sizes = [1, 8], strides = [1, 1]} : vector<8x8xf32> to vector<1x8xf32>
    %135 = vector.shape_cast %134 : vector<1x8xf32> to vector<1x8xf32>
    %136 = vector.broadcast %135 : vector<1x8xf32> to vector<8x8xf32>
    %137 = arith.mulf %133, %136 : vector<8x8xf32>
    %138 = arith.addf %132, %137 : vector<8x8xf32>
    %c200 = arith.constant 200 : index
    %c0_27 = arith.constant 0 : index
    %139 = vector.load %arg1[%c200, %c0_27] : memref<632x8xf32, #tpu.memory_space<vmem>>, vector<8x8xf32>
    %140 = vector.extract_strided_slice %125 {offsets = [2, 0], sizes = [1, 8], strides = [1, 1]} : vector<8x8xf32> to vector<1x8xf32>
    %141 = vector.shape_cast %140 : vector<1x8xf32> to vector<1x8xf32>
    %142 = vector.broadcast %141 : vector<1x8xf32> to vector<8x8xf32>
    %143 = arith.mulf %139, %142 : vector<8x8xf32>
    %144 = arith.addf %138, %143 : vector<8x8xf32>
    %c208 = arith.constant 208 : index
    %c0_28 = arith.constant 0 : index
    %145 = vector.load %arg1[%c208, %c0_28] : memref<632x8xf32, #tpu.memory_space<vmem>>, vector<8x8xf32>
    %146 = vector.extract_strided_slice %125 {offsets = [3, 0], sizes = [1, 8], strides = [1, 1]} : vector<8x8xf32> to vector<1x8xf32>
    %147 = vector.shape_cast %146 : vector<1x8xf32> to vector<1x8xf32>
    %148 = vector.broadcast %147 : vector<1x8xf32> to vector<8x8xf32>
    %149 = arith.mulf %145, %148 : vector<8x8xf32>
    %150 = arith.addf %144, %149 : vector<8x8xf32>
    %c216 = arith.constant 216 : index
    %c0_29 = arith.constant 0 : index
    %151 = vector.load %arg1[%c216, %c0_29] : memref<632x8xf32, #tpu.memory_space<vmem>>, vector<8x8xf32>
    %152 = vector.extract_strided_slice %125 {offsets = [4, 0], sizes = [1, 8], strides = [1, 1]} : vector<8x8xf32> to vector<1x8xf32>
    %153 = vector.shape_cast %152 : vector<1x8xf32> to vector<1x8xf32>
    %154 = vector.broadcast %153 : vector<1x8xf32> to vector<8x8xf32>
    %155 = arith.mulf %151, %154 : vector<8x8xf32>
    %156 = arith.addf %150, %155 : vector<8x8xf32>
    %c224 = arith.constant 224 : index
    %c0_30 = arith.constant 0 : index
    %157 = vector.load %arg1[%c224, %c0_30] : memref<632x8xf32, #tpu.memory_space<vmem>>, vector<8x8xf32>
    %158 = vector.extract_strided_slice %125 {offsets = [5, 0], sizes = [1, 8], strides = [1, 1]} : vector<8x8xf32> to vector<1x8xf32>
    %159 = vector.shape_cast %158 : vector<1x8xf32> to vector<1x8xf32>
    %160 = vector.broadcast %159 : vector<1x8xf32> to vector<8x8xf32>
    %161 = arith.mulf %157, %160 : vector<8x8xf32>
    %162 = arith.addf %156, %161 : vector<8x8xf32>
    %cst_31 = arith.constant 0.000000e+00 : f32
    %163 = vector.broadcast %cst_31 : f32 to vector<8x8xf32>
    %164 = arith.maximumf %162, %163 : vector<8x8xf32>
    %c288 = arith.constant 288 : index
    %c0_32 = arith.constant 0 : index
    %165 = vector.load %arg1[%c288, %c0_32] : memref<632x8xf32, #tpu.memory_space<vmem>>, vector<8x8xf32>
    %c240 = arith.constant 240 : index
    %c0_33 = arith.constant 0 : index
    %166 = vector.load %arg1[%c240, %c0_33] : memref<632x8xf32, #tpu.memory_space<vmem>>, vector<8x8xf32>
    %167 = vector.extract_strided_slice %164 {offsets = [0, 0], sizes = [1, 8], strides = [1, 1]} : vector<8x8xf32> to vector<1x8xf32>
    %168 = vector.shape_cast %167 : vector<1x8xf32> to vector<1x8xf32>
    %169 = vector.broadcast %168 : vector<1x8xf32> to vector<8x8xf32>
    %170 = arith.mulf %166, %169 : vector<8x8xf32>
    %171 = arith.addf %165, %170 : vector<8x8xf32>
    %c248 = arith.constant 248 : index
    %c0_34 = arith.constant 0 : index
    %172 = vector.load %arg1[%c248, %c0_34] : memref<632x8xf32, #tpu.memory_space<vmem>>, vector<8x8xf32>
    %173 = vector.extract_strided_slice %164 {offsets = [1, 0], sizes = [1, 8], strides = [1, 1]} : vector<8x8xf32> to vector<1x8xf32>
    %174 = vector.shape_cast %173 : vector<1x8xf32> to vector<1x8xf32>
    %175 = vector.broadcast %174 : vector<1x8xf32> to vector<8x8xf32>
    %176 = arith.mulf %172, %175 : vector<8x8xf32>
    %177 = arith.addf %171, %176 : vector<8x8xf32>
    %c256 = arith.constant 256 : index
    %c0_35 = arith.constant 0 : index
    %178 = vector.load %arg1[%c256, %c0_35] : memref<632x8xf32, #tpu.memory_space<vmem>>, vector<8x8xf32>
    %179 = vector.extract_strided_slice %164 {offsets = [2, 0], sizes = [1, 8], strides = [1, 1]} : vector<8x8xf32> to vector<1x8xf32>
    %180 = vector.shape_cast %179 : vector<1x8xf32> to vector<1x8xf32>
    %181 = vector.broadcast %180 : vector<1x8xf32> to vector<8x8xf32>
    %182 = arith.mulf %178, %181 : vector<8x8xf32>
    %183 = arith.addf %177, %182 : vector<8x8xf32>
    %c264 = arith.constant 264 : index
    %c0_36 = arith.constant 0 : index
    %184 = vector.load %arg1[%c264, %c0_36] : memref<632x8xf32, #tpu.memory_space<vmem>>, vector<8x8xf32>
    %185 = vector.extract_strided_slice %164 {offsets = [3, 0], sizes = [1, 8], strides = [1, 1]} : vector<8x8xf32> to vector<1x8xf32>
    %186 = vector.shape_cast %185 : vector<1x8xf32> to vector<1x8xf32>
    %187 = vector.broadcast %186 : vector<1x8xf32> to vector<8x8xf32>
    %188 = arith.mulf %184, %187 : vector<8x8xf32>
    %189 = arith.addf %183, %188 : vector<8x8xf32>
    %c272 = arith.constant 272 : index
    %c0_37 = arith.constant 0 : index
    %190 = vector.load %arg1[%c272, %c0_37] : memref<632x8xf32, #tpu.memory_space<vmem>>, vector<8x8xf32>
    %191 = vector.extract_strided_slice %164 {offsets = [4, 0], sizes = [1, 8], strides = [1, 1]} : vector<8x8xf32> to vector<1x8xf32>
    %192 = vector.shape_cast %191 : vector<1x8xf32> to vector<1x8xf32>
    %193 = vector.broadcast %192 : vector<1x8xf32> to vector<8x8xf32>
    %194 = arith.mulf %190, %193 : vector<8x8xf32>
    %195 = arith.addf %189, %194 : vector<8x8xf32>
    %c280 = arith.constant 280 : index
    %c0_38 = arith.constant 0 : index
    %196 = vector.load %arg1[%c280, %c0_38] : memref<632x8xf32, #tpu.memory_space<vmem>>, vector<8x8xf32>
    %197 = vector.extract_strided_slice %164 {offsets = [5, 0], sizes = [1, 8], strides = [1, 1]} : vector<8x8xf32> to vector<1x8xf32>
    %198 = vector.shape_cast %197 : vector<1x8xf32> to vector<1x8xf32>
    %199 = vector.broadcast %198 : vector<1x8xf32> to vector<8x8xf32>
    %200 = arith.mulf %196, %199 : vector<8x8xf32>
    %201 = arith.addf %195, %200 : vector<8x8xf32>
    %cst_39 = arith.constant 0.000000e+00 : f32
    %202 = vector.broadcast %cst_39 : f32 to vector<8x8xf32>
    %203 = arith.maximumf %201, %202 : vector<8x8xf32>
    %c344 = arith.constant 344 : index
    %c0_40 = arith.constant 0 : index
    %204 = vector.load %arg1[%c344, %c0_40] : memref<632x8xf32, #tpu.memory_space<vmem>>, vector<8x8xf32>
    %c296 = arith.constant 296 : index
    %c0_41 = arith.constant 0 : index
    %205 = vector.load %arg1[%c296, %c0_41] : memref<632x8xf32, #tpu.memory_space<vmem>>, vector<8x8xf32>
    %206 = vector.extract_strided_slice %203 {offsets = [0, 0], sizes = [1, 8], strides = [1, 1]} : vector<8x8xf32> to vector<1x8xf32>
    %207 = vector.shape_cast %206 : vector<1x8xf32> to vector<1x8xf32>
    %208 = vector.broadcast %207 : vector<1x8xf32> to vector<8x8xf32>
    %209 = arith.mulf %205, %208 : vector<8x8xf32>
    %210 = arith.addf %204, %209 : vector<8x8xf32>
    %c304 = arith.constant 304 : index
    %c0_42 = arith.constant 0 : index
    %211 = vector.load %arg1[%c304, %c0_42] : memref<632x8xf32, #tpu.memory_space<vmem>>, vector<8x8xf32>
    %212 = vector.extract_strided_slice %203 {offsets = [1, 0], sizes = [1, 8], strides = [1, 1]} : vector<8x8xf32> to vector<1x8xf32>
    %213 = vector.shape_cast %212 : vector<1x8xf32> to vector<1x8xf32>
    %214 = vector.broadcast %213 : vector<1x8xf32> to vector<8x8xf32>
    %215 = arith.mulf %211, %214 : vector<8x8xf32>
    %216 = arith.addf %210, %215 : vector<8x8xf32>
    %c312 = arith.constant 312 : index
    %c0_43 = arith.constant 0 : index
    %217 = vector.load %arg1[%c312, %c0_43] : memref<632x8xf32, #tpu.memory_space<vmem>>, vector<8x8xf32>
    %218 = vector.extract_strided_slice %203 {offsets = [2, 0], sizes = [1, 8], strides = [1, 1]} : vector<8x8xf32> to vector<1x8xf32>
    %219 = vector.shape_cast %218 : vector<1x8xf32> to vector<1x8xf32>
    %220 = vector.broadcast %219 : vector<1x8xf32> to vector<8x8xf32>
    %221 = arith.mulf %217, %220 : vector<8x8xf32>
    %222 = arith.addf %216, %221 : vector<8x8xf32>
    %c320 = arith.constant 320 : index
    %c0_44 = arith.constant 0 : index
    %223 = vector.load %arg1[%c320, %c0_44] : memref<632x8xf32, #tpu.memory_space<vmem>>, vector<8x8xf32>
    %224 = vector.extract_strided_slice %203 {offsets = [3, 0], sizes = [1, 8], strides = [1, 1]} : vector<8x8xf32> to vector<1x8xf32>
    %225 = vector.shape_cast %224 : vector<1x8xf32> to vector<1x8xf32>
    %226 = vector.broadcast %225 : vector<1x8xf32> to vector<8x8xf32>
    %227 = arith.mulf %223, %226 : vector<8x8xf32>
    %228 = arith.addf %222, %227 : vector<8x8xf32>
    %c328 = arith.constant 328 : index
    %c0_45 = arith.constant 0 : index
    %229 = vector.load %arg1[%c328, %c0_45] : memref<632x8xf32, #tpu.memory_space<vmem>>, vector<8x8xf32>
    %230 = vector.extract_strided_slice %203 {offsets = [4, 0], sizes = [1, 8], strides = [1, 1]} : vector<8x8xf32> to vector<1x8xf32>
    %231 = vector.shape_cast %230 : vector<1x8xf32> to vector<1x8xf32>
    %232 = vector.broadcast %231 : vector<1x8xf32> to vector<8x8xf32>
    %233 = arith.mulf %229, %232 : vector<8x8xf32>
    %234 = arith.addf %228, %233 : vector<8x8xf32>
    %c336 = arith.constant 336 : index
    %c0_46 = arith.constant 0 : index
    %235 = vector.load %arg1[%c336, %c0_46] : memref<632x8xf32, #tpu.memory_space<vmem>>, vector<8x8xf32>
    %236 = vector.extract_strided_slice %203 {offsets = [5, 0], sizes = [1, 8], strides = [1, 1]} : vector<8x8xf32> to vector<1x8xf32>
    %237 = vector.shape_cast %236 : vector<1x8xf32> to vector<1x8xf32>
    %238 = vector.broadcast %237 : vector<1x8xf32> to vector<8x8xf32>
    %239 = arith.mulf %235, %238 : vector<8x8xf32>
    %240 = arith.addf %234, %239 : vector<8x8xf32>
    %241 = arith.addf %125, %240 : vector<8x8xf32>
    %c400 = arith.constant 400 : index
    %c0_47 = arith.constant 0 : index
    %242 = vector.load %arg1[%c400, %c0_47] : memref<632x8xf32, #tpu.memory_space<vmem>>, vector<8x8xf32>
    %c352 = arith.constant 352 : index
    %c0_48 = arith.constant 0 : index
    %243 = vector.load %arg1[%c352, %c0_48] : memref<632x8xf32, #tpu.memory_space<vmem>>, vector<8x8xf32>
    %244 = vector.extract_strided_slice %241 {offsets = [0, 0], sizes = [1, 8], strides = [1, 1]} : vector<8x8xf32> to vector<1x8xf32>
    %245 = vector.shape_cast %244 : vector<1x8xf32> to vector<1x8xf32>
    %246 = vector.broadcast %245 : vector<1x8xf32> to vector<8x8xf32>
    %247 = arith.mulf %243, %246 : vector<8x8xf32>
    %248 = arith.addf %242, %247 : vector<8x8xf32>
    %c360 = arith.constant 360 : index
    %c0_49 = arith.constant 0 : index
    %249 = vector.load %arg1[%c360, %c0_49] : memref<632x8xf32, #tpu.memory_space<vmem>>, vector<8x8xf32>
    %250 = vector.extract_strided_slice %241 {offsets = [1, 0], sizes = [1, 8], strides = [1, 1]} : vector<8x8xf32> to vector<1x8xf32>
    %251 = vector.shape_cast %250 : vector<1x8xf32> to vector<1x8xf32>
    %252 = vector.broadcast %251 : vector<1x8xf32> to vector<8x8xf32>
    %253 = arith.mulf %249, %252 : vector<8x8xf32>
    %254 = arith.addf %248, %253 : vector<8x8xf32>
    %c368 = arith.constant 368 : index
    %c0_50 = arith.constant 0 : index
    %255 = vector.load %arg1[%c368, %c0_50] : memref<632x8xf32, #tpu.memory_space<vmem>>, vector<8x8xf32>
    %256 = vector.extract_strided_slice %241 {offsets = [2, 0], sizes = [1, 8], strides = [1, 1]} : vector<8x8xf32> to vector<1x8xf32>
    %257 = vector.shape_cast %256 : vector<1x8xf32> to vector<1x8xf32>
    %258 = vector.broadcast %257 : vector<1x8xf32> to vector<8x8xf32>
    %259 = arith.mulf %255, %258 : vector<8x8xf32>
    %260 = arith.addf %254, %259 : vector<8x8xf32>
    %c376 = arith.constant 376 : index
    %c0_51 = arith.constant 0 : index
    %261 = vector.load %arg1[%c376, %c0_51] : memref<632x8xf32, #tpu.memory_space<vmem>>, vector<8x8xf32>
    %262 = vector.extract_strided_slice %241 {offsets = [3, 0], sizes = [1, 8], strides = [1, 1]} : vector<8x8xf32> to vector<1x8xf32>
    %263 = vector.shape_cast %262 : vector<1x8xf32> to vector<1x8xf32>
    %264 = vector.broadcast %263 : vector<1x8xf32> to vector<8x8xf32>
    %265 = arith.mulf %261, %264 : vector<8x8xf32>
    %266 = arith.addf %260, %265 : vector<8x8xf32>
    %c384 = arith.constant 384 : index
    %c0_52 = arith.constant 0 : index
    %267 = vector.load %arg1[%c384, %c0_52] : memref<632x8xf32, #tpu.memory_space<vmem>>, vector<8x8xf32>
    %268 = vector.extract_strided_slice %241 {offsets = [4, 0], sizes = [1, 8], strides = [1, 1]} : vector<8x8xf32> to vector<1x8xf32>
    %269 = vector.shape_cast %268 : vector<1x8xf32> to vector<1x8xf32>
    %270 = vector.broadcast %269 : vector<1x8xf32> to vector<8x8xf32>
    %271 = arith.mulf %267, %270 : vector<8x8xf32>
    %272 = arith.addf %266, %271 : vector<8x8xf32>
    %c392 = arith.constant 392 : index
    %c0_53 = arith.constant 0 : index
    %273 = vector.load %arg1[%c392, %c0_53] : memref<632x8xf32, #tpu.memory_space<vmem>>, vector<8x8xf32>
    %274 = vector.extract_strided_slice %241 {offsets = [5, 0], sizes = [1, 8], strides = [1, 1]} : vector<8x8xf32> to vector<1x8xf32>
    %275 = vector.shape_cast %274 : vector<1x8xf32> to vector<1x8xf32>
    %276 = vector.broadcast %275 : vector<1x8xf32> to vector<8x8xf32>
    %277 = arith.mulf %273, %276 : vector<8x8xf32>
    %278 = arith.addf %272, %277 : vector<8x8xf32>
    %cst_54 = arith.constant 0.000000e+00 : f32
    %279 = vector.broadcast %cst_54 : f32 to vector<8x8xf32>
    %280 = arith.maximumf %278, %279 : vector<8x8xf32>
    %c456 = arith.constant 456 : index
    %c0_55 = arith.constant 0 : index
    %281 = vector.load %arg1[%c456, %c0_55] : memref<632x8xf32, #tpu.memory_space<vmem>>, vector<8x8xf32>
    %c408 = arith.constant 408 : index
    %c0_56 = arith.constant 0 : index
    %282 = vector.load %arg1[%c408, %c0_56] : memref<632x8xf32, #tpu.memory_space<vmem>>, vector<8x8xf32>
    %283 = vector.extract_strided_slice %280 {offsets = [0, 0], sizes = [1, 8], strides = [1, 1]} : vector<8x8xf32> to vector<1x8xf32>
    %284 = vector.shape_cast %283 : vector<1x8xf32> to vector<1x8xf32>
    %285 = vector.broadcast %284 : vector<1x8xf32> to vector<8x8xf32>
    %286 = arith.mulf %282, %285 : vector<8x8xf32>
    %287 = arith.addf %281, %286 : vector<8x8xf32>
    %c416 = arith.constant 416 : index
    %c0_57 = arith.constant 0 : index
    %288 = vector.load %arg1[%c416, %c0_57] : memref<632x8xf32, #tpu.memory_space<vmem>>, vector<8x8xf32>
    %289 = vector.extract_strided_slice %280 {offsets = [1, 0], sizes = [1, 8], strides = [1, 1]} : vector<8x8xf32> to vector<1x8xf32>
    %290 = vector.shape_cast %289 : vector<1x8xf32> to vector<1x8xf32>
    %291 = vector.broadcast %290 : vector<1x8xf32> to vector<8x8xf32>
    %292 = arith.mulf %288, %291 : vector<8x8xf32>
    %293 = arith.addf %287, %292 : vector<8x8xf32>
    %c424 = arith.constant 424 : index
    %c0_58 = arith.constant 0 : index
    %294 = vector.load %arg1[%c424, %c0_58] : memref<632x8xf32, #tpu.memory_space<vmem>>, vector<8x8xf32>
    %295 = vector.extract_strided_slice %280 {offsets = [2, 0], sizes = [1, 8], strides = [1, 1]} : vector<8x8xf32> to vector<1x8xf32>
    %296 = vector.shape_cast %295 : vector<1x8xf32> to vector<1x8xf32>
    %297 = vector.broadcast %296 : vector<1x8xf32> to vector<8x8xf32>
    %298 = arith.mulf %294, %297 : vector<8x8xf32>
    %299 = arith.addf %293, %298 : vector<8x8xf32>
    %c432 = arith.constant 432 : index
    %c0_59 = arith.constant 0 : index
    %300 = vector.load %arg1[%c432, %c0_59] : memref<632x8xf32, #tpu.memory_space<vmem>>, vector<8x8xf32>
    %301 = vector.extract_strided_slice %280 {offsets = [3, 0], sizes = [1, 8], strides = [1, 1]} : vector<8x8xf32> to vector<1x8xf32>
    %302 = vector.shape_cast %301 : vector<1x8xf32> to vector<1x8xf32>
    %303 = vector.broadcast %302 : vector<1x8xf32> to vector<8x8xf32>
    %304 = arith.mulf %300, %303 : vector<8x8xf32>
    %305 = arith.addf %299, %304 : vector<8x8xf32>
    %c440 = arith.constant 440 : index
    %c0_60 = arith.constant 0 : index
    %306 = vector.load %arg1[%c440, %c0_60] : memref<632x8xf32, #tpu.memory_space<vmem>>, vector<8x8xf32>
    %307 = vector.extract_strided_slice %280 {offsets = [4, 0], sizes = [1, 8], strides = [1, 1]} : vector<8x8xf32> to vector<1x8xf32>
    %308 = vector.shape_cast %307 : vector<1x8xf32> to vector<1x8xf32>
    %309 = vector.broadcast %308 : vector<1x8xf32> to vector<8x8xf32>
    %310 = arith.mulf %306, %309 : vector<8x8xf32>
    %311 = arith.addf %305, %310 : vector<8x8xf32>
    %c448 = arith.constant 448 : index
    %c0_61 = arith.constant 0 : index
    %312 = vector.load %arg1[%c448, %c0_61] : memref<632x8xf32, #tpu.memory_space<vmem>>, vector<8x8xf32>
    %313 = vector.extract_strided_slice %280 {offsets = [5, 0], sizes = [1, 8], strides = [1, 1]} : vector<8x8xf32> to vector<1x8xf32>
    %314 = vector.shape_cast %313 : vector<1x8xf32> to vector<1x8xf32>
    %315 = vector.broadcast %314 : vector<1x8xf32> to vector<8x8xf32>
    %316 = arith.mulf %312, %315 : vector<8x8xf32>
    %317 = arith.addf %311, %316 : vector<8x8xf32>
    %cst_62 = arith.constant 0.000000e+00 : f32
    %318 = vector.broadcast %cst_62 : f32 to vector<8x8xf32>
    %319 = arith.maximumf %317, %318 : vector<8x8xf32>
    %c512 = arith.constant 512 : index
    %c0_63 = arith.constant 0 : index
    %320 = vector.load %arg1[%c512, %c0_63] : memref<632x8xf32, #tpu.memory_space<vmem>>, vector<8x8xf32>
    %c464 = arith.constant 464 : index
    %c0_64 = arith.constant 0 : index
    %321 = vector.load %arg1[%c464, %c0_64] : memref<632x8xf32, #tpu.memory_space<vmem>>, vector<8x8xf32>
    %322 = vector.extract_strided_slice %319 {offsets = [0, 0], sizes = [1, 8], strides = [1, 1]} : vector<8x8xf32> to vector<1x8xf32>
    %323 = vector.shape_cast %322 : vector<1x8xf32> to vector<1x8xf32>
    %324 = vector.broadcast %323 : vector<1x8xf32> to vector<8x8xf32>
    %325 = arith.mulf %321, %324 : vector<8x8xf32>
    %326 = arith.addf %320, %325 : vector<8x8xf32>
    %c472 = arith.constant 472 : index
    %c0_65 = arith.constant 0 : index
    %327 = vector.load %arg1[%c472, %c0_65] : memref<632x8xf32, #tpu.memory_space<vmem>>, vector<8x8xf32>
    %328 = vector.extract_strided_slice %319 {offsets = [1, 0], sizes = [1, 8], strides = [1, 1]} : vector<8x8xf32> to vector<1x8xf32>
    %329 = vector.shape_cast %328 : vector<1x8xf32> to vector<1x8xf32>
    %330 = vector.broadcast %329 : vector<1x8xf32> to vector<8x8xf32>
    %331 = arith.mulf %327, %330 : vector<8x8xf32>
    %332 = arith.addf %326, %331 : vector<8x8xf32>
    %c480 = arith.constant 480 : index
    %c0_66 = arith.constant 0 : index
    %333 = vector.load %arg1[%c480, %c0_66] : memref<632x8xf32, #tpu.memory_space<vmem>>, vector<8x8xf32>
    %334 = vector.extract_strided_slice %319 {offsets = [2, 0], sizes = [1, 8], strides = [1, 1]} : vector<8x8xf32> to vector<1x8xf32>
    %335 = vector.shape_cast %334 : vector<1x8xf32> to vector<1x8xf32>
    %336 = vector.broadcast %335 : vector<1x8xf32> to vector<8x8xf32>
    %337 = arith.mulf %333, %336 : vector<8x8xf32>
    %338 = arith.addf %332, %337 : vector<8x8xf32>
    %c488 = arith.constant 488 : index
    %c0_67 = arith.constant 0 : index
    %339 = vector.load %arg1[%c488, %c0_67] : memref<632x8xf32, #tpu.memory_space<vmem>>, vector<8x8xf32>
    %340 = vector.extract_strided_slice %319 {offsets = [3, 0], sizes = [1, 8], strides = [1, 1]} : vector<8x8xf32> to vector<1x8xf32>
    %341 = vector.shape_cast %340 : vector<1x8xf32> to vector<1x8xf32>
    %342 = vector.broadcast %341 : vector<1x8xf32> to vector<8x8xf32>
    %343 = arith.mulf %339, %342 : vector<8x8xf32>
    %344 = arith.addf %338, %343 : vector<8x8xf32>
    %c496 = arith.constant 496 : index
    %c0_68 = arith.constant 0 : index
    %345 = vector.load %arg1[%c496, %c0_68] : memref<632x8xf32, #tpu.memory_space<vmem>>, vector<8x8xf32>
    %346 = vector.extract_strided_slice %319 {offsets = [4, 0], sizes = [1, 8], strides = [1, 1]} : vector<8x8xf32> to vector<1x8xf32>
    %347 = vector.shape_cast %346 : vector<1x8xf32> to vector<1x8xf32>
    %348 = vector.broadcast %347 : vector<1x8xf32> to vector<8x8xf32>
    %349 = arith.mulf %345, %348 : vector<8x8xf32>
    %350 = arith.addf %344, %349 : vector<8x8xf32>
    %c504 = arith.constant 504 : index
    %c0_69 = arith.constant 0 : index
    %351 = vector.load %arg1[%c504, %c0_69] : memref<632x8xf32, #tpu.memory_space<vmem>>, vector<8x8xf32>
    %352 = vector.extract_strided_slice %319 {offsets = [5, 0], sizes = [1, 8], strides = [1, 1]} : vector<8x8xf32> to vector<1x8xf32>
    %353 = vector.shape_cast %352 : vector<1x8xf32> to vector<1x8xf32>
    %354 = vector.broadcast %353 : vector<1x8xf32> to vector<8x8xf32>
    %355 = arith.mulf %351, %354 : vector<8x8xf32>
    %356 = arith.addf %350, %355 : vector<8x8xf32>
    %357 = arith.addf %241, %356 : vector<8x8xf32>
    %c624 = arith.constant 624 : index
    %c0_70 = arith.constant 0 : index
    %358 = vector.load %arg1[%c624, %c0_70] : memref<632x8xf32, #tpu.memory_space<vmem>>, vector<8x8xf32>
    %c576 = arith.constant 576 : index
    %c0_71 = arith.constant 0 : index
    %359 = vector.load %arg1[%c576, %c0_71] : memref<632x8xf32, #tpu.memory_space<vmem>>, vector<8x8xf32>
    %360 = vector.extract_strided_slice %357 {offsets = [0, 0], sizes = [1, 8], strides = [1, 1]} : vector<8x8xf32> to vector<1x8xf32>
    %361 = vector.shape_cast %360 : vector<1x8xf32> to vector<1x8xf32>
    %362 = vector.broadcast %361 : vector<1x8xf32> to vector<8x8xf32>
    %363 = arith.mulf %359, %362 : vector<8x8xf32>
    %364 = arith.addf %358, %363 : vector<8x8xf32>
    %c584 = arith.constant 584 : index
    %c0_72 = arith.constant 0 : index
    %365 = vector.load %arg1[%c584, %c0_72] : memref<632x8xf32, #tpu.memory_space<vmem>>, vector<8x8xf32>
    %366 = vector.extract_strided_slice %357 {offsets = [1, 0], sizes = [1, 8], strides = [1, 1]} : vector<8x8xf32> to vector<1x8xf32>
    %367 = vector.shape_cast %366 : vector<1x8xf32> to vector<1x8xf32>
    %368 = vector.broadcast %367 : vector<1x8xf32> to vector<8x8xf32>
    %369 = arith.mulf %365, %368 : vector<8x8xf32>
    %370 = arith.addf %364, %369 : vector<8x8xf32>
    %c592 = arith.constant 592 : index
    %c0_73 = arith.constant 0 : index
    %371 = vector.load %arg1[%c592, %c0_73] : memref<632x8xf32, #tpu.memory_space<vmem>>, vector<8x8xf32>
    %372 = vector.extract_strided_slice %357 {offsets = [2, 0], sizes = [1, 8], strides = [1, 1]} : vector<8x8xf32> to vector<1x8xf32>
    %373 = vector.shape_cast %372 : vector<1x8xf32> to vector<1x8xf32>
    %374 = vector.broadcast %373 : vector<1x8xf32> to vector<8x8xf32>
    %375 = arith.mulf %371, %374 : vector<8x8xf32>
    %376 = arith.addf %370, %375 : vector<8x8xf32>
    %c600 = arith.constant 600 : index
    %c0_74 = arith.constant 0 : index
    %377 = vector.load %arg1[%c600, %c0_74] : memref<632x8xf32, #tpu.memory_space<vmem>>, vector<8x8xf32>
    %378 = vector.extract_strided_slice %357 {offsets = [3, 0], sizes = [1, 8], strides = [1, 1]} : vector<8x8xf32> to vector<1x8xf32>
    %379 = vector.shape_cast %378 : vector<1x8xf32> to vector<1x8xf32>
    %380 = vector.broadcast %379 : vector<1x8xf32> to vector<8x8xf32>
    %381 = arith.mulf %377, %380 : vector<8x8xf32>
    %382 = arith.addf %376, %381 : vector<8x8xf32>
    %c608 = arith.constant 608 : index
    %c0_75 = arith.constant 0 : index
    %383 = vector.load %arg1[%c608, %c0_75] : memref<632x8xf32, #tpu.memory_space<vmem>>, vector<8x8xf32>
    %384 = vector.extract_strided_slice %357 {offsets = [4, 0], sizes = [1, 8], strides = [1, 1]} : vector<8x8xf32> to vector<1x8xf32>
    %385 = vector.shape_cast %384 : vector<1x8xf32> to vector<1x8xf32>
    %386 = vector.broadcast %385 : vector<1x8xf32> to vector<8x8xf32>
    %387 = arith.mulf %383, %386 : vector<8x8xf32>
    %388 = arith.addf %382, %387 : vector<8x8xf32>
    %c616 = arith.constant 616 : index
    %c0_76 = arith.constant 0 : index
    %389 = vector.load %arg1[%c616, %c0_76] : memref<632x8xf32, #tpu.memory_space<vmem>>, vector<8x8xf32>
    %390 = vector.extract_strided_slice %357 {offsets = [5, 0], sizes = [1, 8], strides = [1, 1]} : vector<8x8xf32> to vector<1x8xf32>
    %391 = vector.shape_cast %390 : vector<1x8xf32> to vector<1x8xf32>
    %392 = vector.broadcast %391 : vector<1x8xf32> to vector<8x8xf32>
    %393 = arith.mulf %389, %392 : vector<8x8xf32>
    %394 = arith.addf %388, %393 : vector<8x8xf32>
    %395 = arith.subf %394, %356 : vector<8x8xf32>
    %396 = arith.subf %395, %240 : vector<8x8xf32>
    %c0_77 = arith.constant 0 : index
    %c0_78 = arith.constant 0 : index
    %397 = vector.load %arg2[%c0_77, %c0_78] : memref<24x8xf32, #tpu.memory_space<vmem>>, vector<8x8xf32>
    tpu.vector_store %arg2[%c0_77, %c0_78], %396 {strides = array<i32>} : memref<24x8xf32, #tpu.memory_space<vmem>>, vector<8x8xf32>,
    %c568 = arith.constant 568 : index
    %c0_79 = arith.constant 0 : index
    %398 = vector.load %arg1[%c568, %c0_79] : memref<632x8xf32, #tpu.memory_space<vmem>>, vector<8x8xf32>
    %c520 = arith.constant 520 : index
    %c0_80 = arith.constant 0 : index
    %399 = vector.load %arg1[%c520, %c0_80] : memref<632x8xf32, #tpu.memory_space<vmem>>, vector<8x8xf32>
    %400 = vector.extract_strided_slice %394 {offsets = [0, 0], sizes = [1, 8], strides = [1, 1]} : vector<8x8xf32> to vector<1x8xf32>
    %401 = vector.shape_cast %400 : vector<1x8xf32> to vector<1x8xf32>
    %402 = vector.broadcast %401 : vector<1x8xf32> to vector<8x8xf32>
    %403 = arith.mulf %399, %402 : vector<8x8xf32>
    %404 = arith.addf %398, %403 : vector<8x8xf32>
    %c528 = arith.constant 528 : index
    %c0_81 = arith.constant 0 : index
    %405 = vector.load %arg1[%c528, %c0_81] : memref<632x8xf32, #tpu.memory_space<vmem>>, vector<8x8xf32>
    %406 = vector.extract_strided_slice %394 {offsets = [1, 0], sizes = [1, 8], strides = [1, 1]} : vector<8x8xf32> to vector<1x8xf32>
    %407 = vector.shape_cast %406 : vector<1x8xf32> to vector<1x8xf32>
    %408 = vector.broadcast %407 : vector<1x8xf32> to vector<8x8xf32>
    %409 = arith.mulf %405, %408 : vector<8x8xf32>
    %410 = arith.addf %404, %409 : vector<8x8xf32>
    %c536 = arith.constant 536 : index
    %c0_82 = arith.constant 0 : index
    %411 = vector.load %arg1[%c536, %c0_82] : memref<632x8xf32, #tpu.memory_space<vmem>>, vector<8x8xf32>
    %412 = vector.extract_strided_slice %394 {offsets = [2, 0], sizes = [1, 8], strides = [1, 1]} : vector<8x8xf32> to vector<1x8xf32>
    %413 = vector.shape_cast %412 : vector<1x8xf32> to vector<1x8xf32>
    %414 = vector.broadcast %413 : vector<1x8xf32> to vector<8x8xf32>
    %415 = arith.mulf %411, %414 : vector<8x8xf32>
    %416 = arith.addf %410, %415 : vector<8x8xf32>
    %c544 = arith.constant 544 : index
    %c0_83 = arith.constant 0 : index
    %417 = vector.load %arg1[%c544, %c0_83] : memref<632x8xf32, #tpu.memory_space<vmem>>, vector<8x8xf32>
    %418 = vector.extract_strided_slice %394 {offsets = [3, 0], sizes = [1, 8], strides = [1, 1]} : vector<8x8xf32> to vector<1x8xf32>
    %419 = vector.shape_cast %418 : vector<1x8xf32> to vector<1x8xf32>
    %420 = vector.broadcast %419 : vector<1x8xf32> to vector<8x8xf32>
    %421 = arith.mulf %417, %420 : vector<8x8xf32>
    %422 = arith.addf %416, %421 : vector<8x8xf32>
    %c552 = arith.constant 552 : index
    %c0_84 = arith.constant 0 : index
    %423 = vector.load %arg1[%c552, %c0_84] : memref<632x8xf32, #tpu.memory_space<vmem>>, vector<8x8xf32>
    %424 = vector.extract_strided_slice %394 {offsets = [4, 0], sizes = [1, 8], strides = [1, 1]} : vector<8x8xf32> to vector<1x8xf32>
    %425 = vector.shape_cast %424 : vector<1x8xf32> to vector<1x8xf32>
    %426 = vector.broadcast %425 : vector<1x8xf32> to vector<8x8xf32>
    %427 = arith.mulf %423, %426 : vector<8x8xf32>
    %428 = arith.addf %422, %427 : vector<8x8xf32>
    %c560 = arith.constant 560 : index
    %c0_85 = arith.constant 0 : index
    %429 = vector.load %arg1[%c560, %c0_85] : memref<632x8xf32, #tpu.memory_space<vmem>>, vector<8x8xf32>
    %430 = vector.extract_strided_slice %394 {offsets = [5, 0], sizes = [1, 8], strides = [1, 1]} : vector<8x8xf32> to vector<1x8xf32>
    %431 = vector.shape_cast %430 : vector<1x8xf32> to vector<1x8xf32>
    %432 = vector.broadcast %431 : vector<1x8xf32> to vector<8x8xf32>
    %433 = arith.mulf %429, %432 : vector<8x8xf32>
    %434 = arith.addf %428, %433 : vector<8x8xf32>
    %c8_86 = arith.constant 8 : index
    %c0_87 = arith.constant 0 : index
    %435 = vector.load %arg2[%c8_86, %c0_87] : memref<24x8xf32, #tpu.memory_space<vmem>>, vector<8x8xf32>
    tpu.vector_store %arg2[%c8_86, %c0_87], %434 {strides = array<i32>} : memref<24x8xf32, #tpu.memory_space<vmem>>, vector<8x8xf32>,
    %c568_88 = arith.constant 568 : index
    %c0_89 = arith.constant 0 : index
    %436 = vector.load %arg1[%c568_88, %c0_89] : memref<632x8xf32, #tpu.memory_space<vmem>>, vector<8x8xf32>
    %c520_90 = arith.constant 520 : index
    %c0_91 = arith.constant 0 : index
    %437 = vector.load %arg1[%c520_90, %c0_91] : memref<632x8xf32, #tpu.memory_space<vmem>>, vector<8x8xf32>
    %438 = vector.extract_strided_slice %357 {offsets = [0, 0], sizes = [1, 8], strides = [1, 1]} : vector<8x8xf32> to vector<1x8xf32>
    %439 = vector.shape_cast %438 : vector<1x8xf32> to vector<1x8xf32>
    %440 = vector.broadcast %439 : vector<1x8xf32> to vector<8x8xf32>
    %441 = arith.mulf %437, %440 : vector<8x8xf32>
    %442 = arith.addf %436, %441 : vector<8x8xf32>
    %c528_92 = arith.constant 528 : index
    %c0_93 = arith.constant 0 : index
    %443 = vector.load %arg1[%c528_92, %c0_93] : memref<632x8xf32, #tpu.memory_space<vmem>>, vector<8x8xf32>
    %444 = vector.extract_strided_slice %357 {offsets = [1, 0], sizes = [1, 8], strides = [1, 1]} : vector<8x8xf32> to vector<1x8xf32>
    %445 = vector.shape_cast %444 : vector<1x8xf32> to vector<1x8xf32>
    %446 = vector.broadcast %445 : vector<1x8xf32> to vector<8x8xf32>
    %447 = arith.mulf %443, %446 : vector<8x8xf32>
    %448 = arith.addf %442, %447 : vector<8x8xf32>
    %c536_94 = arith.constant 536 : index
    %c0_95 = arith.constant 0 : index
    %449 = vector.load %arg1[%c536_94, %c0_95] : memref<632x8xf32, #tpu.memory_space<vmem>>, vector<8x8xf32>
    %450 = vector.extract_strided_slice %357 {offsets = [2, 0], sizes = [1, 8], strides = [1, 1]} : vector<8x8xf32> to vector<1x8xf32>
    %451 = vector.shape_cast %450 : vector<1x8xf32> to vector<1x8xf32>
    %452 = vector.broadcast %451 : vector<1x8xf32> to vector<8x8xf32>
    %453 = arith.mulf %449, %452 : vector<8x8xf32>
    %454 = arith.addf %448, %453 : vector<8x8xf32>
    %c544_96 = arith.constant 544 : index
    %c0_97 = arith.constant 0 : index
    %455 = vector.load %arg1[%c544_96, %c0_97] : memref<632x8xf32, #tpu.memory_space<vmem>>, vector<8x8xf32>
    %456 = vector.extract_strided_slice %357 {offsets = [3, 0], sizes = [1, 8], strides = [1, 1]} : vector<8x8xf32> to vector<1x8xf32>
    %457 = vector.shape_cast %456 : vector<1x8xf32> to vector<1x8xf32>
    %458 = vector.broadcast %457 : vector<1x8xf32> to vector<8x8xf32>
    %459 = arith.mulf %455, %458 : vector<8x8xf32>
    %460 = arith.addf %454, %459 : vector<8x8xf32>
    %c552_98 = arith.constant 552 : index
    %c0_99 = arith.constant 0 : index
    %461 = vector.load %arg1[%c552_98, %c0_99] : memref<632x8xf32, #tpu.memory_space<vmem>>, vector<8x8xf32>
    %462 = vector.extract_strided_slice %357 {offsets = [4, 0], sizes = [1, 8], strides = [1, 1]} : vector<8x8xf32> to vector<1x8xf32>
    %463 = vector.shape_cast %462 : vector<1x8xf32> to vector<1x8xf32>
    %464 = vector.broadcast %463 : vector<1x8xf32> to vector<8x8xf32>
    %465 = arith.mulf %461, %464 : vector<8x8xf32>
    %466 = arith.addf %460, %465 : vector<8x8xf32>
    %c560_100 = arith.constant 560 : index
    %c0_101 = arith.constant 0 : index
    %467 = vector.load %arg1[%c560_100, %c0_101] : memref<632x8xf32, #tpu.memory_space<vmem>>, vector<8x8xf32>
    %468 = vector.extract_strided_slice %357 {offsets = [5, 0], sizes = [1, 8], strides = [1, 1]} : vector<8x8xf32> to vector<1x8xf32>
    %469 = vector.shape_cast %468 : vector<1x8xf32> to vector<1x8xf32>
    %470 = vector.broadcast %469 : vector<1x8xf32> to vector<8x8xf32>
    %471 = arith.mulf %467, %470 : vector<8x8xf32>
    %472 = arith.addf %466, %471 : vector<8x8xf32>
    %c16_102 = arith.constant 16 : index
    %c0_103 = arith.constant 0 : index
    %473 = vector.load %arg2[%c16_102, %c0_103] : memref<24x8xf32, #tpu.memory_space<vmem>>, vector<8x8xf32>
    tpu.vector_store %arg2[%c16_102, %c0_103], %472 {strides = array<i32>} : memref<24x8xf32, #tpu.memory_space<vmem>>, vector<8x8xf32>,
    return
  }
  func.func @transform_0(%arg0: i32) -> (i32, i32) {
    %c0_i32 = arith.constant 0 : i32
    %c0_i32_0 = arith.constant 0 : i32
    %c0_i32_1 = arith.constant 0 : i32
    return %c0_i32, %c0_i32_0 : i32, i32
  }
  func.func @transform_1(%arg0: i32) -> (i32, i32) {
    %c0_i32 = arith.constant 0 : i32
    %c0_i32_0 = arith.constant 0 : i32
    %c0_i32_1 = arith.constant 0 : i32
    return %c0_i32, %c0_i32_0 : i32, i32
  }
}

</mosaic_0001>

<bundles_post_ra>
// kernel: tpu_custom_call.1
= control target key start
LH: loop header
LB: loop body
LE: loop exit
PB: predicated region body
PF: predicated region fallthrough
CT: control target
= control target key end

     0   :  { %v11_v0 = vlaneseq  ;;  %vm461_vm0 = vcmask 64512   ;;  %s901_s0 = inlined_call_operand.vmem [shape: f32[632,8], index: 0, kind: input, shape index: {}]   ;;  %s902_s1 = inlined_call_operand.vmem [shape: f32[24,8], index: 1, kind: output, shape index: {}]  }
   0x1   :  { %v544_v2 = vld [vmem:[%s901_s0] sm:$0xff]  ;;  %v10_v7 = vld [vmem:[%s901_s0 + $0x10] sm:$0xff]  ;;  %v17_v8 = vld [vmem:[%s901_s0 + $0x18] sm:$0xff] }
   0x2   :  { %v12_v1 = vshrl.u32 %v11_v0, 7  ;;  %v9_v13 = vld [vmem:[%s901_s0 + $0x40] sm:$0xff]  ;;  %v31_v19 = vld [vmem:[%s901_s0 + $0x28] sm:$0xff]  ;;  %v38_v23 = vld [vmem:[%s901_s0 + $0x30] sm:$0xff] }
   0x3   :  { %v24_v14 = vld [vmem:[%s901_s0 + $0x20] sm:$0xff]  ;;  %v45_v27 = vld [vmem:[%s901_s0 + $0x38] sm:$0xff]  ;;  %v54_v35 = vld [vmem:[%s901_s0 + $0x48] sm:$0xff] }
   0x4   :  { %v546_v3 = vsub.s32 0, %v12_v1  ;;  %v548_v4 = vsub.s32 1, %v12_v1  ;;  %v550_v5 = vsub.s32 2, %v12_v1  ;;  %v552_v6 = vsub.s32 3, %v12_v1  ;;  %v61_v36 = vld [vmem:[%s901_s0 + $0x50] sm:$0xff]  ;;  %v53_v40 = vld [vmem:[%s901_s0 + $0x78] sm:$0xff] }
   0x5   :  { %v566_v12 = vsub.s32 4, %v12_v1  ;;  %v576_v18 = vsub.s32 5, %v12_v1  ;;  %v68_v41 = vld [vmem:[%s901_s0 + $0x58] sm:$0xff]  ;;  %v75_v45 = vld [vmem:[%s901_s0 + $0x60] sm:$0xff]  ;;  %v82_v49 = vld [vmem:[%s901_s0 + $0x68] sm:$0xff] }
   0x6   :  { %v14_v9 = vrot.slane %v544_v2, %v546_v3  ;;  %v21_v10 = vrot.slane %v544_v2, %v548_v4  ;;  %v28_v11 = vrot.slane %v544_v2, %v550_v5  ;;  %v35_v17 = vrot.slane %v544_v2, %v552_v6  ;;  %v89_v53 = vld [vmem:[%s901_s0 + $0x70] sm:$0xff]  ;;  %v98_v61 = vld [vmem:[%s901_s0 + $0x80] sm:$0xff]  ;;  %v105_v62 = vld [vmem:[%s901_s0 + $0x88] sm:$0xff] }
   0x7   :  { %v42_v22 = vrot.slane %v544_v2, %v566_v12  ;;  %v49_v26 = vrot.slane %v544_v2, %v576_v18 }
   0x8   :  { %v15_v15 = vmul.f32 %v14_v9, %v10_v7  ;;  %v22_v16 = vmul.f32 %v21_v10, %v17_v8  ;;  %v29_v21 = vmul.f32 %v28_v11, %v24_v14  ;;  %v36_v25 = vmul.f32 %v35_v17, %v31_v19  ;;  %v97_v7 = vld [vmem:[%s901_s0 + $0xb0] sm:$0xff]  ;;  %v126_v17 = vld [vmem:[%s901_s0 + $0xa0] sm:$0xff] }
   0x9   :  { %v43_v29 = vmul.f32 %v42_v22, %v38_v23  ;;  %v50_v31 = vmul.f32 %v49_v26, %v45_v27  ;;  %v112_v8 = vld [vmem:[%s901_s0 + $0x90] sm:$0xff]  ;;  %v133_v22 = vld [vmem:[%s901_s0 + $0xa8] sm:$0xff] }
   0xa   :  { %v16_v20 = vadd.f32 %v15_v15, %v9_v13  ;;  %v119_v13 = vld [vmem:[%s901_s0 + $0x98] sm:$0xff] }
   0xc   :  { %v23_v24 = vadd.f32 %v22_v16, %v16_v20 }
   0xe   :  { %v30_v28 = vadd.f32 %v29_v21, %v23_v24 }
  0x10   :  { %v37_v30 = vadd.f32 %v36_v25, %v30_v28 }
  0x12   :  { %v44_v32 = vadd.f32 %v43_v29, %v37_v30 }
  0x14   :  { %v51_v33 = vadd.f32 %v50_v31, %v44_v32  ;;  %v149_v31 = vld [vmem:[%s901_s0 + $0x8] sm:$0xff] }
  0x16   :  { %v52_v34 = vmax.f32 %v51_v33, 0.0 }
  0x18   :  { %v58_v37 = vrot.slane %v52_v34, %v546_v3  ;;  %v65_v38 = vrot.slane %v52_v34, %v548_v4  ;;  %v72_v39 = vrot.slane %v52_v34, %v550_v5  ;;  %v79_v44 = vrot.slane %v52_v34, %v552_v6 }
  0x19   :  { %v86_v48 = vrot.slane %v52_v34, %v566_v12  ;;  %v93_v52 = vrot.slane %v52_v34, %v576_v18 }
  0x1a   :  { %v59_v42 = vmul.f32 %v58_v37, %v54_v35  ;;  %v66_v43 = vmul.f32 %v65_v38, %v61_v36  ;;  %v73_v47 = vmul.f32 %v72_v39, %v68_v41  ;;  %v80_v51 = vmul.f32 %v79_v44, %v75_v45  ;;  %v153_v35 = vld [vmem:[%s901_s0 + $0xb8] sm:$0xff]  ;;  %v160_v36 = vld [vmem:[%s901_s0 + $0xc0] sm:$0xff]  ;;  %v174_v44 = vld [vmem:[%s901_s0 + $0xd0] sm:$0xff] }
  0x1b   :  { %v87_v55 = vmul.f32 %v86_v48, %v82_v49  ;;  %v94_v57 = vmul.f32 %v93_v52, %v89_v53  ;;  %v181_v48 = vld [vmem:[%s901_s0 + $0xd8] sm:$0xff]  ;;  %v188_v52 = vld [vmem:[%s901_s0 + $0xe0] sm:$0xff] }
  0x1c   :  { %v60_v46 = vadd.f32 %v59_v42, %v53_v40  ;;  %v167_v40 = vld [vmem:[%s901_s0 + $0xc8] sm:$0xff] }
  0x1e   :  { %v67_v50 = vadd.f32 %v66_v43, %v60_v46 }
  0x20   :  { %v74_v54 = vadd.f32 %v73_v47, %v67_v50 }
  0x22   :  { %v81_v56 = vadd.f32 %v80_v51, %v74_v54 }
  0x24   :  { %v88_v58 = vadd.f32 %v87_v55, %v81_v56 }
  0x26   :  { %v95_v59 = vadd.f32 %v94_v57, %v88_v58 }
  0x28   :  { %v96_v60 = vmax.f32 %v95_v59, 0.0 }
  0x2a   :  { %v102_v63 = vrot.slane %v96_v60, %v546_v3  ;;  %v109_v0 = vrot.slane %v96_v60, %v548_v4  ;;  %v116_v1 = vrot.slane %v96_v60, %v550_v5  ;;  %v123_v11 = vrot.slane %v96_v60, %v552_v6 }
  0x2b   :  { %v130_v16 = vrot.slane %v96_v60, %v566_v12  ;;  %v137_v21 = vrot.slane %v96_v60, %v576_v18  ;;  %v197_v60 = vld [vmem:[%s901_s0 + $0xf0] sm:$0xff] }
  0x2c   :  { %v103_v9 = vmul.f32 %v102_v63, %v98_v61  ;;  %v110_v10 = vmul.f32 %v109_v0, %v105_v62  ;;  %v117_v15 = vmul.f32 %v116_v1, %v112_v8  ;;  %v124_v20 = vmul.f32 %v123_v11, %v119_v13  ;;  %v204_v61 = vld [vmem:[%s901_s0 + $0xf8] sm:$0xff]  ;;  %v196_v1 = vld [vmem:[%s901_s0 + $0x120] sm:$0xff]  ;;  %v218_v11 = vld [vmem:[%s901_s0 + $0x108] sm:$0xff] }
  0x2d   :  { %v131_v24 = vmul.f32 %v130_v16, %v126_v17  ;;  %v138_v26 = vmul.f32 %v137_v21, %v133_v22  ;;  %v225_v16 = vld [vmem:[%s901_s0 + $0x110] sm:$0xff]  ;;  %v232_v21 = vld [vmem:[%s901_s0 + $0x118] sm:$0xff] }
  0x2e   :  { %v104_v14 = vadd.f32 %v103_v9, %v97_v7  ;;  %v211_v7 = vld [vmem:[%s901_s0 + $0x100] sm:$0xff] }
  0x30   :  { %v111_v19 = vadd.f32 %v110_v10, %v104_v14 }
  0x32   :  { %v118_v23 = vadd.f32 %v117_v15, %v111_v19 }
  0x34   :  { %v125_v25 = vadd.f32 %v124_v20, %v118_v23 }
  0x36   :  { %v132_v27 = vadd.f32 %v131_v24, %v125_v25 }
  0x38   :  { %v139_v28 = vadd.f32 %v138_v26, %v132_v27 }
  0x3a   :  { %v143_v29 = vrot.slane %v139_v28, %v550_v5  ;;  %v147_v30 = vrot.slane %v139_v28, %v576_v18 }
  0x3c   :  { %v148_v32 = vmax.f32 %v143_v29, %v147_v30  ;;  %v241_v29 = vld [vmem:[%s901_s0 + $0x128] sm:$0xff]  ;;  %v248_v30 = vld [vmem:[%s901_s0 + $0x130] sm:$0xff] }
  0x3e   :  { %v150_v33 = vmul.f32 %v149_v31, %v148_v32 }
  0x40   :  { %v651_v34 = vadd.f32 %v150_v33, %v544_v2  ;;  %v152_v2 = vld [vmem:[%s901_s0 + $0xe8] sm:$0xff] }
  0x42   :  { %v157_v37 = vrot.slane %v651_v34, %v546_v3  ;;  %v164_v38 = vrot.slane %v651_v34, %v548_v4  ;;  %v171_v39 = vrot.slane %v651_v34, %v550_v5  ;;  %v178_v43 = vrot.slane %v651_v34, %v552_v6 }
  0x43   :  { %v185_v47 = vrot.slane %v651_v34, %v566_v12  ;;  %v192_v51 = vrot.slane %v651_v34, %v576_v18 }
  0x44   :  { %v158_v41 = vmul.f32 %v157_v37, %v153_v35  ;;  %v165_v42 = vmul.f32 %v164_v38, %v160_v36  ;;  %v172_v46 = vmul.f32 %v171_v39, %v167_v40  ;;  %v179_v50 = vmul.f32 %v178_v43, %v174_v44  ;;  %v240_v35 = vld [vmem:[%s901_s0 + $0x158] sm:$0xff]  ;;  %v269_v43 = vld [vmem:[%s901_s0 + $0x148] sm:$0xff] }
  0x45   :  { %v186_v54 = vmul.f32 %v185_v47, %v181_v48  ;;  %v193_v56 = vmul.f32 %v192_v51, %v188_v52  ;;  %v255_v36 = vld [vmem:[%s901_s0 + $0x138] sm:$0xff]  ;;  %v276_v47 = vld [vmem:[%s901_s0 + $0x150] sm:$0xff] }
  0x46   :  { %v159_v45 = vadd.f32 %v158_v41, %v152_v2  ;;  %v262_v2 = vld [vmem:[%s901_s0 + $0x140] sm:$0xff] }
  0x48   :  { %v166_v49 = vadd.f32 %v165_v42, %v159_v45 }
  0x4a   :  { %v173_v53 = vadd.f32 %v172_v46, %v166_v49 }
  0x4c   :  { %v180_v55 = vadd.f32 %v179_v50, %v173_v53 }
  0x4e   :  { %v187_v57 = vadd.f32 %v186_v54, %v180_v55  ;;  %v285_v55 = vld [vmem:[%s901_s0 + $0x160] sm:$0xff] }
  0x50   :  { %v194_v58 = vadd.f32 %v193_v56, %v187_v57  ;;  %v292_v56 = vld [vmem:[%s901_s0 + $0x168] sm:$0xff] }
  0x52   :  { %v195_v59 = vmax.f32 %v194_v58, 0.0 }
  0x54   :  { %v201_v62 = vrot.slane %v195_v59, %v546_v3  ;;  %v208_v63 = vrot.slane %v195_v59, %v548_v4  ;;  %v215_v0 = vrot.slane %v195_v59, %v550_v5  ;;  %v222_v10 = vrot.slane %v195_v59, %v552_v6 }
  0x55   :  { %v229_v15 = vrot.slane %v195_v59, %v566_v12  ;;  %v236_v20 = vrot.slane %v195_v59, %v576_v18 }
  0x56   :  { %v202_v8 = vmul.f32 %v201_v62, %v197_v60  ;;  %v209_v9 = vmul.f32 %v208_v63, %v204_v61  ;;  %v216_v14 = vmul.f32 %v215_v0, %v211_v7  ;;  %v223_v19 = vmul.f32 %v222_v10, %v218_v11  ;;  %v299_v60 = vld [vmem:[%s901_s0 + $0x170] sm:$0xff]  ;;  %v306_v0 = vld [vmem:[%s901_s0 + $0x178] sm:$0xff] }
  0x57   :  { %v230_v23 = vmul.f32 %v229_v15, %v225_v16  ;;  %v237_v25 = vmul.f32 %v236_v20, %v232_v21 }
  0x58   :  { %v203_v13 = vadd.f32 %v202_v8, %v196_v1 }
  0x5a   :  { %v210_v17 = vadd.f32 %v209_v9, %v203_v13  ;;  %v313_v9 = vld [vmem:[%s901_s0 + $0x180] sm:$0xff] }
  0x5c   :  { %v217_v22 = vadd.f32 %v216_v14, %v210_v17  ;;  %v320_v14 = vld [vmem:[%s901_s0 + $0x188] sm:$0xff] }
  0x5e   :  { %v224_v24 = vadd.f32 %v223_v19, %v217_v22 }
  0x60   :  { %v231_v26 = vadd.f32 %v230_v23, %v224_v24  ;;  %v329_v23 = vld [vmem:[%s901_s0 + $0x198] sm:$0xff]  ;;  %v336_v24 = vld [vmem:[%s901_s0 + $0x1a0] sm:$0xff] }
  0x62   :  { %v238_v27 = vadd.f32 %v237_v25, %v231_v26 }
  0x64   :  { %v239_v28 = vmax.f32 %v238_v27, 0.0 }
  0x66   :  { %v245_v31 = vrot.slane %v239_v28, %v546_v3  ;;  %v252_v32 = vrot.slane %v239_v28, %v548_v4  ;;  %v259_v33 = vrot.slane %v239_v28, %v550_v5  ;;  %v266_v39 = vrot.slane %v239_v28, %v552_v6 }
  0x67   :  { %v273_v42 = vrot.slane %v239_v28, %v566_v12  ;;  %v280_v46 = vrot.slane %v239_v28, %v576_v18  ;;  %v328_v28 = vld [vmem:[%s901_s0 + $0x1c8] sm:$0xff] }
  0x68   :  { %v246_v37 = vmul.f32 %v245_v31, %v241_v29  ;;  %v253_v38 = vmul.f32 %v252_v32, %v248_v30  ;;  %v260_v41 = vmul.f32 %v259_v33, %v255_v36  ;;  %v267_v45 = vmul.f32 %v266_v39, %v262_v2  ;;  %v343_v29 = vld [vmem:[%s901_s0 + $0x1a8] sm:$0xff]  ;;  %v350_v33 = vld [vmem:[%s901_s0 + $0x1b0] sm:$0xff] }
  0x69   :  { %v274_v49 = vmul.f32 %v273_v42, %v269_v43  ;;  %v281_v51 = vmul.f32 %v280_v46, %v276_v47 }
  0x6a   :  { %v247_v40 = vadd.f32 %v246_v37, %v240_v35 }
  0x6c   :  { %v254_v44 = vadd.f32 %v253_v38, %v247_v40  ;;  %v357_v38 = vld [vmem:[%s901_s0 + $0x1b8] sm:$0xff] }
  0x6e   :  { %v261_v48 = vadd.f32 %v260_v41, %v254_v44  ;;  %v364_v41 = vld [vmem:[%s901_s0 + $0x1c0] sm:$0xff] }
  0x70   :  { %v268_v50 = vadd.f32 %v267_v45, %v261_v48 }
  0x72   :  { %v275_v52 = vadd.f32 %v274_v49, %v268_v50  ;;  %v373_v49 = vld [vmem:[%s901_s0 + $0x1d0] sm:$0xff]  ;;  %v380_v50 = vld [vmem:[%s901_s0 + $0x1d8] sm:$0xff] }
  0x74   :  { %v740_v53 = vadd.f32 %v281_v51, %v275_v52 }
  0x76   :  { %v744_v54 = vadd.f32 %v740_v53, %v651_v34  ;;  %v284_v34 = vld [vmem:[%s901_s0 + $0x190] sm:$0xff] }
  0x78   :  { %v289_v57 = vrot.slane %v744_v54, %v546_v3  ;;  %v296_v58 = vrot.slane %v744_v54, %v548_v4  ;;  %v303_v59 = vrot.slane %v744_v54, %v550_v5  ;;  %v310_v63 = vrot.slane %v744_v54, %v552_v6 }
  0x79   :  { %v317_v8 = vrot.slane %v744_v54, %v566_v12  ;;  %v324_v13 = vrot.slane %v744_v54, %v576_v18 }
  0x7a   :  { %v290_v61 = vmul.f32 %v289_v57, %v285_v55  ;;  %v297_v62 = vmul.f32 %v296_v58, %v292_v56  ;;  %v304_v7 = vmul.f32 %v303_v59, %v299_v60  ;;  %v311_v11 = vmul.f32 %v310_v63, %v306_v0  ;;  %v372_v56 = vld [vmem:[%s901_s0 + $0x200] sm:$0xff]  ;;  %v394_v60 = vld [vmem:[%s901_s0 + $0x1e8] sm:$0xff]  ;;  %v401_v0 = vld [vmem:[%s901_s0 + $0x1f0] sm:$0xff] }
  0x7b   :  { %v318_v16 = vmul.f32 %v317_v8, %v313_v9  ;;  %v325_v19 = vmul.f32 %v324_v13, %v320_v14  ;;  %v387_v57 = vld [vmem:[%s901_s0 + $0x1e0] sm:$0xff]  ;;  %v408_v9 = vld [vmem:[%s901_s0 + $0x1f8] sm:$0xff] }
  0x7c   :  { %v291_v1 = vadd.f32 %v290_v61, %v284_v34 }
  0x7e   :  { %v298_v10 = vadd.f32 %v297_v62, %v291_v1 }
  0x80   :  { %v305_v15 = vadd.f32 %v304_v7, %v298_v10 }
  0x82   :  { %v312_v17 = vadd.f32 %v311_v11, %v305_v15 }
  0x84   :  { %v319_v20 = vadd.f32 %v318_v16, %v312_v17 }
  0x86   :  { %v326_v21 = vadd.f32 %v325_v19, %v319_v20  ;;  %v417_v19 = vld [vmem:[%s901_s0 + $0x240] sm:$0xff]  ;;  %v424_v20 = vld [vmem:[%s901_s0 + $0x248] sm:$0xff] }
  0x88   :  { %v327_v22 = vmax.f32 %v326_v21, 0.0 }
  0x8a   :  { %v333_v25 = vrot.slane %v327_v22, %v546_v3  ;;  %v340_v26 = vrot.slane %v327_v22, %v548_v4  ;;  %v347_v27 = vrot.slane %v327_v22, %v550_v5  ;;  %v354_v32 = vrot.slane %v327_v22, %v552_v6 }
  0x8b   :  { %v361_v37 = vrot.slane %v327_v22, %v566_v12  ;;  %v368_v40 = vrot.slane %v327_v22, %v576_v18 }
  0x8c   :  { %v334_v30 = vmul.f32 %v333_v25, %v329_v23  ;;  %v341_v31 = vmul.f32 %v340_v26, %v336_v24  ;;  %v348_v36 = vmul.f32 %v347_v27, %v343_v29  ;;  %v355_v2 = vmul.f32 %v354_v32, %v350_v33  ;;  %v464_v24 = vld [vmem:[%s901_s0 + $0x208] sm:$0xff]  ;;  %v416_v25 = vld [vmem:[%s901_s0 + $0x270] sm:$0xff]  ;;  %v438_v32 = vld [vmem:[%s901_s0 + $0x258] sm:$0xff] }
  0x8d   :  { %v362_v43 = vmul.f32 %v361_v37, %v357_v38  ;;  %v369_v45 = vmul.f32 %v368_v40, %v364_v41  ;;  %v431_v26 = vld [vmem:[%s901_s0 + $0x250] sm:$0xff] }
  0x8e   :  { %v335_v35 = vadd.f32 %v334_v30, %v328_v28  ;;  %v463_v30 = vld [vmem:[%s901_s0 + $0x238] sm:$0xff] }
  0x90   :  { %v342_v39 = vadd.f32 %v341_v31, %v335_v35  ;;  %v478_v31 = vld [vmem:[%s901_s0 + $0x218] sm:$0xff] }
  0x92   :  { %v349_v42 = vadd.f32 %v348_v36, %v342_v39  ;;  %v485_v39 = vld [vmem:[%s901_s0 + $0x220] sm:$0xff] }
  0x94   :  { %v356_v44 = vadd.f32 %v355_v2, %v349_v42  ;;  %v445_v2 = vld [vmem:[%s901_s0 + $0x260] sm:$0xff] }
  0x96   :  { %v363_v46 = vadd.f32 %v362_v43, %v356_v44 }
  0x98   :  { %v370_v47 = vadd.f32 %v369_v45, %v363_v46  ;;  %v492_v45 = vld [vmem:[%s901_s0 + $0x228] sm:$0xff] }
  0x99   :  { %v452_v46 = vld [vmem:[%s901_s0 + $0x268] sm:$0xff] }
  0x9a   :  { %v371_v48 = vmax.f32 %v370_v47, 0.0 }
  0x9c   :  { %v377_v51 = vrot.slane %v371_v48, %v546_v3  ;;  %v384_v52 = vrot.slane %v371_v48, %v548_v4  ;;  %v391_v55 = vrot.slane %v371_v48, %v550_v5  ;;  %v398_v34 = vrot.slane %v371_v48, %v552_v6 }
  0x9d   :  { %v405_v63 = vrot.slane %v371_v48, %v566_v12  ;;  %v412_v8 = vrot.slane %v371_v48, %v576_v18 }
  0x9e   :  { %v378_v58 = vmul.f32 %v377_v51, %v373_v49  ;;  %v385_v59 = vmul.f32 %v384_v52, %v380_v50  ;;  %v392_v62 = vmul.f32 %v391_v55, %v387_v57  ;;  %v399_v7 = vmul.f32 %v398_v34, %v394_v60  ;;  %v499_v51 = vld [vmem:[%s901_s0 + $0x230] sm:$0xff] }
  0x9f   :  { %v406_v11 = vmul.f32 %v405_v63, %v401_v0  ;;  %v413_v14 = vmul.f32 %v412_v8, %v408_v9 }
  0xa0   :  { %v379_v61 = vadd.f32 %v378_v58, %v372_v56 }
  0xa2   :  { %v386_v1 = vadd.f32 %v385_v59, %v379_v61 }
  0xa4   :  { %v393_v10 = vadd.f32 %v392_v62, %v386_v1 }
  0xa6   :  { %v400_v13 = vadd.f32 %v399_v7, %v393_v10 }
  0xa8   :  { %v407_v15 = vadd.f32 %v406_v11, %v400_v13 }
  0xaa   :  { %v414_v16 = vadd.f32 %v413_v14, %v407_v15 }
  0xac   :  { %v415_v17 = vadd.f32 %v414_v16, %v744_v54  ;;  %v471_v54 = vld [vmem:[%s901_s0 + $0x210] sm:$0xff] }
  0xae   :  { %v421_v21 = vrot.slane %v415_v17, %v546_v3  ;;  %v428_v22 = vrot.slane %v415_v17, %v548_v4  ;;  %v435_v23 = vrot.slane %v415_v17, %v550_v5  ;;  %v442_v29 = vrot.slane %v415_v17, %v552_v6 }
  0xaf   :  { %v449_v38 = vrot.slane %v415_v17, %v566_v12  ;;  %v456_v44 = vrot.slane %v415_v17, %v576_v18 }
  0xb0   :  { %v422_v27 = vmul.f32 %v421_v21, %v417_v19  ;;  %v429_v28 = vmul.f32 %v428_v22, %v424_v20  ;;  %v509_v33 = vmul.f32 %v464_v24, %v421_v21  ;;  %v512_v35 = vmul.f32 %v471_v54, %v428_v22 }
  0xb1   :  { %v436_v37 = vmul.f32 %v435_v23, %v431_v26  ;;  %v515_v41 = vmul.f32 %v478_v31, %v435_v23  ;;  %v443_v43 = vmul.f32 %v442_v29, %v438_v32  ;;  %v518_v48 = vmul.f32 %v485_v39, %v442_v29 }
  0xb2   :  { %v423_v36 = vadd.f32 %v422_v27, %v416_v25  ;;  %v510_v40 = vadd.f32 %v509_v33, %v463_v30  ;;  %v450_v50 = vmul.f32 %v449_v38, %v445_v2  ;;  %v521_v55 = vmul.f32 %v492_v45, %v449_v38 }
  0xb3   :  { %v457_v57 = vmul.f32 %v456_v44, %v452_v46  ;;  %v524_v59 = vmul.f32 %v499_v51, %v456_v44 }
  0xb4   :  { %v430_v42 = vadd.f32 %v429_v28, %v423_v36  ;;  %v513_v47 = vadd.f32 %v512_v35, %v510_v40 }
  0xb6   :  { %v437_v49 = vadd.f32 %v436_v37, %v430_v42  ;;  %v516_v52 = vadd.f32 %v515_v41, %v513_v47 }
  0xb8   :  { %v444_v56 = vadd.f32 %v443_v43, %v437_v49  ;;  %v519_v58 = vadd.f32 %v518_v48, %v516_v52 }
  0xba   :  { %v451_v34 = vadd.f32 %v450_v50, %v444_v56  ;;  %v522_v60 = vadd.f32 %v521_v55, %v519_v58 }
  0xbc   :  { %v458_v61 = vadd.f32 %v457_v57, %v451_v34  ;;  %v525_v62 = vadd.f32 %v524_v59, %v522_v60 }
  0xbe   :  { %v459_v63 = vsub.f32 %v458_v61, %v414_v16  ;;  %v468_v0 = vrot.slane %v458_v61, %v546_v3  ;;  %v475_v1 = vrot.slane %v458_v61, %v548_v4  ;;  %v482_v7 = vrot.slane %v458_v61, %v550_v5  ;;  %526 = vst.msk [vmem:[%s902_s1 + $0x10] sm:$0xff] %vm461_vm0, %v525_v62 }
  0xbf   :  { %v489_v11 = vrot.slane %v458_v61, %v552_v6  ;;  %v496_v5 = vrot.slane %v458_v61, %v566_v12  ;;  %v503_v15 = vrot.slane %v458_v61, %v576_v18 }
  0xc0   :  { %v460_v8 = vsub.f32 %v459_v63, %v740_v53  ;;  %v469_v9 = vmul.f32 %v468_v0, %v464_v24  ;;  %v476_v10 = vmul.f32 %v475_v1, %v471_v54  ;;  %v483_v4 = vmul.f32 %v482_v7, %v478_v31 }
  0xc1   :  { %v490_v14 = vmul.f32 %v489_v11, %v485_v39  ;;  %v497_v17 = vmul.f32 %v496_v5, %v492_v45  ;;  %v504_v19 = vmul.f32 %v503_v15, %v499_v51 }
  0xc2   :  { %462 = vst.msk [vmem:[%s902_s1] sm:$0xff] %vm461_vm0, %v460_v8  ;;  %v470_v3 = vadd.f32 %v469_v9, %v463_v30 }
  0xc4   :  { %v477_v13 = vadd.f32 %v476_v10, %v470_v3 }
  0xc6   :  { %v484_v16 = vadd.f32 %v483_v4, %v477_v13 }
  0xc8   :  { %v491_v53 = vadd.f32 %v490_v14, %v484_v16 }
  0xca   :  { %v498_v20 = vadd.f32 %v497_v17, %v491_v53 }
  0xcc   :  { %v505_v21 = vadd.f32 %v504_v19, %v498_v20 }
  0xce   :  { %506 = vst.msk [vmem:[%s902_s1 + $0x8] sm:$0xff] %vm461_vm0, %v505_v21 }

</bundles_post_ra>
